<compile_context>
chip_gen: v7x
topology: tpu7x:2x2x1
jax: 0.10.0
libtpu: 0.0.40
codegen_flags: <defaults>
</compile_context>

<pallas_src>
import math

import jax
import jax.numpy as jnp
import numpy as np
from jax.experimental import pallas as pl
from jax.experimental.pallas import tpu as pltpu

# Matches the reference transformer implementation (nn.LayerNorm(d_model, eps=1e-6)).
LN_EPS = 1e-6


def _layer_norm(x, gamma, beta, eps=LN_EPS):
    mean = jnp.mean(x, axis=-1, keepdims=True)
    var = jnp.mean((x - mean) ** 2, axis=-1, keepdims=True)
    return (x - mean) * jax.lax.rsqrt(var + eps) * gamma + beta


def cross_encoder_kernel(q_ref, kv_ref, mask_ref,
                         wq_ref, wk_ref, wv_ref, wfc_ref,
                         ln1g_ref, ln1b_ref,
                         w1_ref, b1_ref, w2_ref, b2_ref,
                         ln2g_ref, ln2b_ref,
                         out_ref, attn_ref):
    f32 = jnp.float32
    n_head, _, d_k = wq_ref.shape
    d_v = wv_ref.shape[2]
    Bb, Lq, Lk = mask_ref.shape

    q2d = q_ref[...]                      # (Bb*Lq, D), compute dtype (bf16 or f32)
    kv2d = kv_ref[...]                    # (Bb*Lk, D)
    cdt = q2d.dtype                       # MXU operand dtype
    q_res = q2d.astype(f32)               # residual kept in f32

    # Hoisted once, reused by every head.
    masked = mask_ref[...] == 0.0         # (Bb, Lq, Lk) bool
    use_approx_recip = cdt != f32         # exact divide for the f32 parity path

    proj = jnp.zeros(q_res.shape, f32)    # accumulated output projection (replaces concat)
    attn_heads = []
    for h in range(n_head):               # static unroll; wX_ref[h] is a free leading-axis index
        # Per-head projections over the whole batch block (rows = Bb*Lq / Bb*Lk).
        qh = jnp.dot(q2d, wq_ref[h], preferred_element_type=cdt)    # (Bb*Lq, d_k), scale folded
        kh = jnp.dot(kv2d, wk_ref[h], preferred_element_type=cdt)   # (Bb*Lk, d_k)
        vh = jnp.dot(kv2d, wv_ref[h], preferred_element_type=cdt)   # (Bb*Lk, d_v)

        # Batched (over Bb) attention scores, f32 accumulation.
        s = jnp.einsum("bqd,bkd->bqk",
                       qh.reshape(Bb, Lq, d_k), kh.reshape(Bb, Lk, d_k),
                       preferred_element_type=f32)                  # (Bb, Lq, Lk)
        s = jnp.where(masked, f32(-1e9), s)
        s = s - jnp.max(s, axis=-1, keepdims=True)
        e = jnp.exp(s)
        denom = jnp.sum(e, axis=-1, keepdims=True)
        a = e * pl.reciprocal(denom, approx=use_approx_recip)       # softmax in f32
        attn_heads.append(a)

        ctx = jnp.einsum("bqk,bkd->bqd",
                         a.astype(cdt), vh.reshape(Bb, Lk, d_v),
                         preferred_element_type=cdt)                # (Bb, Lq, d_v)
        # Accumulate the output projection per head instead of lane-concatenating heads.
        proj = proj + jnp.dot(ctx.reshape(Bb * Lq, d_v), wfc_ref[h],
                              preferred_element_type=f32)

    # Single store of all attention probabilities for this batch block.
    attn_ref[...] = jnp.stack(attn_heads, axis=1).astype(attn_ref.dtype)  # (Bb, H, Lq, Lk)

    # Residual + post-LayerNorm (f32).
    x = _layer_norm(proj + q_res, ln1g_ref[...], ln1b_ref[...])

    # Position-wise FFN: bf16/f32 MXU matmuls, f32 elementwise.
    h1 = jnp.dot(x.astype(cdt), w1_ref[...], preferred_element_type=f32) + b1_ref[...]
    h1 = jnp.maximum(h1, 0.0)
    y = jnp.dot(h1.astype(cdt), w2_ref[...], preferred_element_type=f32) + b2_ref[...]
    out_ref[...] = _layer_norm(y + x, ln2g_ref[...], ln2b_ref[...]).astype(out_ref.dtype)


def cross_encoder_forward(q, kv, mask, params, *, n_head, d_k, d_v,
                          compute_dtype=jnp.bfloat16, batch_block=None):
    """q = cro_input1 (B, Lq, D); kv = cro_input2 (B, Lk, D); mask (B, Lq, Lk), 0 == masked.

    Returns (output (B, Lq, D) float32, attn (B, n_head, Lq, Lk) float32)."""
    B, Lq, D = q.shape
    Lk = kv.shape[1]
    d_inner = params["w1"].shape[1]
    f32 = jnp.float32
    cdt = compute_dtype

    if batch_block is None:
        batch_block = math.gcd(B, 8)      # fuse up to 8 batch elements per grid step
    assert B % batch_block == 0
    num_blocks = B // batch_block

    # Head-major weights; attention scale folded into wq (done once, outside the kernel).
    scale = 1.0 / float(np.sqrt(d_k))
    wq_hm = (params["wq"] * scale).reshape(D, n_head, d_k).transpose(1, 0, 2).astype(cdt)
    wk_hm = params["wk"].reshape(D, n_head, d_k).transpose(1, 0, 2).astype(cdt)
    wv_hm = params["wv"].reshape(D, n_head, d_v).transpose(1, 0, 2).astype(cdt)
    wfc_hm = params["wfc"].reshape(n_head, d_v, D).astype(cdt)
    w1 = params["w1"].astype(cdt)
    w2 = params["w2"].astype(cdt)

    # Flatten batch into rows so all shared-weight matmuls see M = batch_block * L.
    q_flat = q.reshape(B * Lq, D).astype(cdt)
    kv_flat = kv.reshape(B * Lk, D).astype(cdt)
    mask_f32 = mask.astype(f32)

    def _full(shape):
        n = len(shape)
        return pl.BlockSpec(shape, lambda b, _n=n: (0,) * _n)

    grid_spec = pltpu.PrefetchScalarGridSpec(
        num_scalar_prefetch=0,
        grid=(num_blocks,),
        in_specs=[
            pl.BlockSpec((batch_block * Lq, D), lambda b: (b, 0)),
            pl.BlockSpec((batch_block * Lk, D), lambda b: (b, 0)),
            pl.BlockSpec((batch_block, Lq, Lk), lambda b: (b, 0, 0)),
            _full((n_head, D, d_k)),                   # wq (head-major, pre-scaled)
            _full((n_head, D, d_k)),                   # wk
            _full((n_head, D, d_v)),                   # wv
            _full((n_head, d_v, D)),                   # fc
            _full((1, D)), _full((1, D)),              # ln1 gamma/beta
            _full((D, d_inner)), _full((1, d_inner)),  # ffn w1/b1
            _full((d_inner, D)), _full((1, D)),        # ffn w2/b2
            _full((1, D)), _full((1, D)),              # ln2 gamma/beta
        ],
        out_specs=[
            pl.BlockSpec((batch_block * Lq, D), lambda b: (b, 0)),
            pl.BlockSpec((batch_block, n_head, Lq, Lk), lambda b: (b, 0, 0, 0)),
        ],
    )
    out_shape = (jax.ShapeDtypeStruct((B * Lq, D), f32),
                 jax.ShapeDtypeStruct((B, n_head, Lq, Lk), f32))

    # Advisory cost estimate for XLA's scheduler.
    act_bytes = np.dtype(cdt).itemsize
    flops = 2 * B * (Lq * D * n_head * d_k
                     + Lk * D * n_head * (d_k + d_v)
                     + n_head * Lq * Lk * (d_k + d_v)
                     + Lq * n_head * d_v * D
                     + 2 * Lq * D * d_inner)
    weight_elems = (2 * n_head * D * d_k + n_head * D * d_v + n_head * d_v * D
                    + D * d_inner + d_inner * D)
    bytes_accessed = ((B * Lq * D + B * Lk * D + weight_elems) * act_bytes
                      + (B * Lq * Lk + B * Lq * D + B * n_head * Lq * Lk + 6 * D + d_inner) * 4)
    cost = pl.CostEstimate(flops=int(flops),
                           transcendentals=int(B * n_head * Lq * Lk + 2 * B * Lq),
                           bytes_accessed=int(bytes_accessed))

    out_flat, attn = pl.pallas_call(
        cross_encoder_kernel,
        out_shape=out_shape,
        grid_spec=grid_spec,
        compiler_params=pltpu.CompilerParams(dimension_semantics=("parallel",)),
        cost_estimate=cost,
    )(q_flat, kv_flat, mask_f32,
      wq_hm, wk_hm, wv_hm, wfc_hm,
      params["ln1_g"].astype(f32), params["ln1_b"].astype(f32),
      w1, params["b1"].astype(f32), w2, params["b2"].astype(f32),
      params["ln2_g"].astype(f32), params["ln2_b"].astype(f32))

    return out_flat.reshape(B, Lq, D), attn


def reference_forward(q, kv, mask, params, *, n_head, d_k, d_v):
    """Pure-JAX f32 reference of the same forward pass (mirrors the PyTorch module)."""
    B, Lq, D = q.shape
    Lk = kv.shape[1]
    Q = (q @ params["wq"]).reshape(B, Lq, n_head, d_k).transpose(0, 2, 1, 3)
    K = (kv @ params["wk"]).reshape(B, Lk, n_head, d_k).transpose(0, 2, 1, 3)
    V = (kv @ params["wv"]).reshape(B, Lk, n_head, d_v).transpose(0, 2, 1, 3)
    s = jnp.einsum("bhqd,bhkd->bhqk", Q, K) / (d_k ** 0.5)
    s = jnp.where(mask[:, None, :, :] == 0, -1e9, s)
    attn = jax.nn.softmax(s, axis=-1)
    ctx = jnp.einsum("bhqk,bhkd->bhqd", attn, V)
    ctx = ctx.transpose(0, 2, 1, 3).reshape(B, Lq, n_head * d_v)
    x = _layer_norm(ctx @ params["wfc"] + q, params["ln1_g"][0], params["ln1_b"][0])
    h1 = jax.nn.relu(x @ params["w1"] + params["b1"][0])
    y = h1 @ params["w2"] + params["b2"][0]
    out = _layer_norm(y + x, params["ln2_g"][0], params["ln2_b"][0])
    return out, attn


if __name__ == "__main__":
    # Small, module-consistent shapes.
    B, Lq, Lk = 2, 8, 8
    n_head, d_k, d_v = 4, 8, 8
    d_model, d_inner = 32, 64

    key = jax.random.PRNGKey(0)
    ks = jax.random.split(key, 12)
    params = {
        "wq":  0.1 * jax.random.normal(ks[0], (d_model, n_head * d_k), jnp.float32),
        "wk":  0.1 * jax.random.normal(ks[1], (d_model, n_head * d_k), jnp.float32),
        "wv":  0.1 * jax.random.normal(ks[2], (d_model, n_head * d_v), jnp.float32),
        "wfc": 0.1 * jax.random.normal(ks[3], (n_head * d_v, d_model), jnp.float32),
        "ln1_g": jnp.ones((1, d_model), jnp.float32),
        "ln1_b": jnp.zeros((1, d_model), jnp.float32),
        "w1":  0.1 * jax.random.normal(ks[4], (d_model, d_inner), jnp.float32),
        "b1":  0.01 * jax.random.normal(ks[5], (1, d_inner), jnp.float32),
        "w2":  0.1 * jax.random.normal(ks[6], (d_inner, d_model), jnp.float32),
        "b2":  0.01 * jax.random.normal(ks[7], (1, d_model), jnp.float32),
        "ln2_g": jnp.ones((1, d_model), jnp.float32),
        "ln2_b": jnp.zeros((1, d_model), jnp.float32),
    }

    cro_input1 = jax.random.normal(ks[8], (B, Lq, d_model), jnp.float32)
    cro_input2 = jax.random.normal(ks[9], (B, Lk, d_model), jnp.float32)
    # float mask, 1 = attend, 0 = masked. Batch 1 masks out the last 3 key positions.
    mask = jnp.ones((B, Lq, Lk), jnp.float32)
    mask = mask.at[1, :, -3:].set(0.0)

    ref_out, ref_attn = reference_forward(cro_input1, cro_input2, mask, params,
                                          n_head=n_head, d_k=d_k, d_v=d_v)

    # 1) f32 compute path: exact parity with the PyTorch-style reference.
    out32, attn32 = cross_encoder_forward(cro_input1, cro_input2, mask, params,
                                          n_head=n_head, d_k=d_k, d_v=d_v,
                                          compute_dtype=jnp.float32)
    jax.block_until_ready((out32, attn32))
    np.testing.assert_allclose(np.asarray(out32), np.asarray(ref_out), rtol=5e-4, atol=1e-5)
    np.testing.assert_allclose(np.asarray(attn32), np.asarray(ref_attn), rtol=5e-4, atol=1e-5)

    # 2) bf16 MXU path: the performance configuration (f32 accumulation / f32 LN+softmax).
    out16, attn16 = cross_encoder_forward(cro_input1, cro_input2, mask, params,
                                          n_head=n_head, d_k=d_k, d_v=d_v,
                                          compute_dtype=jnp.bfloat16)
    jax.block_until_ready((out16, attn16))
    np.testing.assert_allclose(np.asarray(out16), np.asarray(ref_out), rtol=5e-2, atol=5e-2)
    np.testing.assert_allclose(np.asarray(attn16), np.asarray(ref_attn), rtol=5e-2, atol=5e-2)

    print("KERNEL_OK")
</pallas_src>

<mosaic_0001>
module attributes {stable_mosaic.version = 11 : i64} {
  func.func @cross_encoder_kernel(%arg0: i32, %arg1: memref<16x32xf32, #tpu.memory_space<vmem>>, %arg2: memref<16x32xf32, #tpu.memory_space<vmem>>, %arg3: memref<2x8x8xf32, #tpu.memory_space<vmem>>, %arg4: memref<4x32x8xf32, #tpu.memory_space<vmem>>, %arg5: memref<4x32x8xf32, #tpu.memory_space<vmem>>, %arg6: memref<4x32x8xf32, #tpu.memory_space<vmem>>, %arg7: memref<4x8x32xf32, #tpu.memory_space<vmem>>, %arg8: memref<1x32xf32, #tpu.memory_space<vmem>>, %arg9: memref<1x32xf32, #tpu.memory_space<vmem>>, %arg10: memref<32x64xf32, #tpu.memory_space<vmem>>, %arg11: memref<1x64xf32, #tpu.memory_space<vmem>>, %arg12: memref<64x32xf32, #tpu.memory_space<vmem>>, %arg13: memref<1x32xf32, #tpu.memory_space<vmem>>, %arg14: memref<1x32xf32, #tpu.memory_space<vmem>>, %arg15: memref<1x32xf32, #tpu.memory_space<vmem>>, %arg16: memref<16x32xf32, #tpu.memory_space<vmem>>, %arg17: memref<2x4x8x8xf32, #tpu.memory_space<vmem>>) attributes {dimension_semantics = [#tpu.dimension_semantics<parallel>], iteration_bounds = array<i64: 1>, scalar_prefetch = 0 : i64, scratch_operands = 0 : i64, tpu.core_type = #tpu.core_type<tc>, window_params = [{transform_indices = @transform_0, window_bounds = array<i64: 16, 32>}, {transform_indices = @transform_1, window_bounds = array<i64: 16, 32>}, {transform_indices = @transform_2, window_bounds = array<i64: 2, 8, 8>}, {pipeline_mode = #tpu.pipeline_mode<synchronous>, transform_indices = @transform_3, window_bounds = array<i64: 4, 32, 8>}, {pipeline_mode = #tpu.pipeline_mode<synchronous>, transform_indices = @transform_4, window_bounds = array<i64: 4, 32, 8>}, {pipeline_mode = #tpu.pipeline_mode<synchronous>, transform_indices = @transform_5, window_bounds = array<i64: 4, 32, 8>}, {pipeline_mode = #tpu.pipeline_mode<synchronous>, transform_indices = @transform_6, window_bounds = array<i64: 4, 8, 32>}, {pipeline_mode = #tpu.pipeline_mode<synchronous>, transform_indices = @transform_7, window_bounds = array<i64: 1, 32>}, {pipeline_mode = #tpu.pipeline_mode<synchronous>, transform_indices = @transform_8, window_bounds = array<i64: 1, 32>}, {pipeline_mode = #tpu.pipeline_mode<synchronous>, transform_indices = @transform_9, window_bounds = array<i64: 32, 64>}, {pipeline_mode = #tpu.pipeline_mode<synchronous>, transform_indices = @transform_10, window_bounds = array<i64: 1, 64>}, {pipeline_mode = #tpu.pipeline_mode<synchronous>, transform_indices = @transform_11, window_bounds = array<i64: 64, 32>}, {pipeline_mode = #tpu.pipeline_mode<synchronous>, transform_indices = @transform_12, window_bounds = array<i64: 1, 32>}, {pipeline_mode = #tpu.pipeline_mode<synchronous>, transform_indices = @transform_13, window_bounds = array<i64: 1, 32>}, {pipeline_mode = #tpu.pipeline_mode<synchronous>, transform_indices = @transform_14, window_bounds = array<i64: 1, 32>}, {transform_indices = @transform_15, window_bounds = array<i64: 16, 32>}, {transform_indices = @transform_16, window_bounds = array<i64: 2, 4, 8, 8>}]} {
    %c0 = arith.constant 0 : index
    %c0_0 = arith.constant 0 : index
    %0 = vector.load %arg1[%c0, %c0_0] : memref<16x32xf32, #tpu.memory_space<vmem>>, vector<16x32xf32>
    %c0_1 = arith.constant 0 : index
    %c0_2 = arith.constant 0 : index
    %1 = vector.load %arg2[%c0_1, %c0_2] : memref<16x32xf32, #tpu.memory_space<vmem>>, vector<16x32xf32>
    %c0_3 = arith.constant 0 : index
    %c0_4 = arith.constant 0 : index
    %c0_5 = arith.constant 0 : index
    %2 = vector.load %arg3[%c0_3, %c0_4, %c0_5] : memref<2x8x8xf32, #tpu.memory_space<vmem>>, vector<2x8x8xf32>
    %cst = arith.constant 0.000000e+00 : f32
    %3 = vector.broadcast %cst : f32 to vector<2x8x8xf32>
    %4 = arith.cmpf oeq, %2, %3 : vector<2x8x8xf32>
    %cst_6 = arith.constant 0.000000e+00 : f32
    %5 = vector.broadcast %cst_6 : f32 to vector<16x32xf32>
    %c0_7 = arith.constant 0 : index
    %c0_8 = arith.constant 0 : index
    %c0_9 = arith.constant 0 : index
    %6 = vector.load %arg4[%c0_7, %c0_8, %c0_9] : memref<4x32x8xf32, #tpu.memory_space<vmem>>, vector<1x32x8xf32>
    %7 = vector.shape_cast %6 : vector<1x32x8xf32> to vector<32x8xf32>
    %cst_10 = arith.constant dense<0.000000e+00> : vector<16x8xf32>
    %8 = tpu.matmul %0, %7, %cst_10 {dimension_numbers = #tpu.dot_dimension_numbers<[1], [0], [0], [1], [0, 0, 1, 1], [], []>} : vector<16x32xf32>, vector<32x8xf32>, vector<16x8xf32> -> vector<16x8xf32>
    %c0_11 = arith.constant 0 : index
    %c0_12 = arith.constant 0 : index
    %c0_13 = arith.constant 0 : index
    %9 = vector.load %arg5[%c0_11, %c0_12, %c0_13] : memref<4x32x8xf32, #tpu.memory_space<vmem>>, vector<1x32x8xf32>
    %10 = vector.shape_cast %9 : vector<1x32x8xf32> to vector<32x8xf32>
    %cst_14 = arith.constant dense<0.000000e+00> : vector<16x8xf32>
    %11 = tpu.matmul %1, %10, %cst_14 {dimension_numbers = #tpu.dot_dimension_numbers<[1], [0], [0], [1], [0, 0, 1, 1], [], []>} : vector<16x32xf32>, vector<32x8xf32>, vector<16x8xf32> -> vector<16x8xf32>
    %c0_15 = arith.constant 0 : index
    %c0_16 = arith.constant 0 : index
    %c0_17 = arith.constant 0 : index
    %12 = vector.load %arg6[%c0_15, %c0_16, %c0_17] : memref<4x32x8xf32, #tpu.memory_space<vmem>>, vector<1x32x8xf32>
    %13 = vector.shape_cast %12 : vector<1x32x8xf32> to vector<32x8xf32>
    %cst_18 = arith.constant dense<0.000000e+00> : vector<16x8xf32>
    %14 = tpu.matmul %1, %13, %cst_18 {dimension_numbers = #tpu.dot_dimension_numbers<[1], [0], [0], [1], [0, 0, 1, 1], [], []>} : vector<16x32xf32>, vector<32x8xf32>, vector<16x8xf32> -> vector<16x8xf32>
    %15 = vector.shape_cast %8 : vector<16x8xf32> to vector<2x8x8xf32>
    %16 = vector.shape_cast %11 : vector<16x8xf32> to vector<2x8x8xf32>
    "tpu.trace_start"() <{level = 10 : i32, message = "bqd,bkd->bqk"}> : () -> ()
    %cst_19 = arith.constant dense<0.000000e+00> : vector<2x8x8xf32>
    %17 = tpu.matmul %15, %16, %cst_19 {dimension_numbers = #tpu.dot_dimension_numbers<[2], [2], [1], [1], [0, 0, 0, 1, 1, 1], [0], [0]>} : vector<2x8x8xf32>, vector<2x8x8xf32>, vector<2x8x8xf32> -> vector<2x8x8xf32>
    %cst_20 = arith.constant -1.000000e+09 : f32
    "tpu.trace_stop"() : () -> ()
    %18 = vector.broadcast %cst_20 : f32 to vector<2x8x8xf32>
    %19 = arith.select %4, %18, %17 : vector<2x8x8xi1>, vector<2x8x8xf32>
    %cst_21 = arith.constant dense<0xFF800000> : vector<2x8xf32>
    %20 = vector.multi_reduction <maximumf>, %19, %cst_21 [2] : vector<2x8x8xf32> to vector<2x8xf32>
    %21 = vector.shape_cast %20 : vector<2x8xf32> to vector<2x8x1xf32>
    %22 = vector.broadcast %21 : vector<2x8x1xf32> to vector<2x8x8xf32>
    %23 = arith.subf %19, %22 : vector<2x8x8xf32>
    %24 = math.exp %23 : vector<2x8x8xf32>
    %cst_22 = arith.constant dense<0.000000e+00> : vector<2x8xf32>
    %25 = vector.multi_reduction <add>, %24, %cst_22 [2] : vector<2x8x8xf32> to vector<2x8xf32>
    %26 = vector.shape_cast %25 : vector<2x8xf32> to vector<2x8x1xf32>
    %27 = tpu.reciprocal %26 : vector<2x8x1xf32> -> vector<2x8x1xf32>
    %28 = vector.broadcast %27 : vector<2x8x1xf32> to vector<2x8x8xf32>
    %29 = arith.mulf %24, %28 : vector<2x8x8xf32>
    %30 = vector.shape_cast %14 : vector<16x8xf32> to vector<2x8x8xf32>
    "tpu.trace_start"() <{level = 10 : i32, message = "bqk,bkd->bqd"}> : () -> ()
    %cst_23 = arith.constant dense<0.000000e+00> : vector<2x8x8xf32>
    %31 = tpu.matmul %29, %30, %cst_23 {dimension_numbers = #tpu.dot_dimension_numbers<[2], [1], [1], [2], [0, 0, 0, 1, 1, 2], [0], [0]>} : vector<2x8x8xf32>, vector<2x8x8xf32>, vector<2x8x8xf32> -> vector<2x8x8xf32>
    "tpu.trace_stop"() : () -> ()
    %32 = vector.shape_cast %31 : vector<2x8x8xf32> to vector<16x8xf32>
    %c0_24 = arith.constant 0 : index
    %c0_25 = arith.constant 0 : index
    %c0_26 = arith.constant 0 : index
    %33 = vector.load %arg7[%c0_24, %c0_25, %c0_26] : memref<4x8x32xf32, #tpu.memory_space<vmem>>, vector<1x8x32xf32>
    %34 = vector.shape_cast %33 : vector<1x8x32xf32> to vector<8x32xf32>
    %cst_27 = arith.constant dense<0.000000e+00> : vector<16x32xf32>
    %35 = tpu.matmul %32, %34, %cst_27 {dimension_numbers = #tpu.dot_dimension_numbers<[1], [0], [0], [1], [0, 0, 1, 1], [], []>} : vector<16x8xf32>, vector<8x32xf32>, vector<16x32xf32> -> vector<16x32xf32>
    %36 = arith.addf %5, %35 : vector<16x32xf32>
    %c1 = arith.constant 1 : index
    %c0_28 = arith.constant 0 : index
    %c0_29 = arith.constant 0 : index
    %37 = vector.load %arg4[%c1, %c0_28, %c0_29] : memref<4x32x8xf32, #tpu.memory_space<vmem>>, vector<1x32x8xf32>
    %38 = vector.shape_cast %37 : vector<1x32x8xf32> to vector<32x8xf32>
    %cst_30 = arith.constant dense<0.000000e+00> : vector<16x8xf32>
    %39 = tpu.matmul %0, %38, %cst_30 {dimension_numbers = #tpu.dot_dimension_numbers<[1], [0], [0], [1], [0, 0, 1, 1], [], []>} : vector<16x32xf32>, vector<32x8xf32>, vector<16x8xf32> -> vector<16x8xf32>
    %c1_31 = arith.constant 1 : index
    %c0_32 = arith.constant 0 : index
    %c0_33 = arith.constant 0 : index
    %40 = vector.load %arg5[%c1_31, %c0_32, %c0_33] : memref<4x32x8xf32, #tpu.memory_space<vmem>>, vector<1x32x8xf32>
    %41 = vector.shape_cast %40 : vector<1x32x8xf32> to vector<32x8xf32>
    %cst_34 = arith.constant dense<0.000000e+00> : vector<16x8xf32>
    %42 = tpu.matmul %1, %41, %cst_34 {dimension_numbers = #tpu.dot_dimension_numbers<[1], [0], [0], [1], [0, 0, 1, 1], [], []>} : vector<16x32xf32>, vector<32x8xf32>, vector<16x8xf32> -> vector<16x8xf32>
    %c1_35 = arith.constant 1 : index
    %c0_36 = arith.constant 0 : index
    %c0_37 = arith.constant 0 : index
    %43 = vector.load %arg6[%c1_35, %c0_36, %c0_37] : memref<4x32x8xf32, #tpu.memory_space<vmem>>, vector<1x32x8xf32>
    %44 = vector.shape_cast %43 : vector<1x32x8xf32> to vector<32x8xf32>
    %cst_38 = arith.constant dense<0.000000e+00> : vector<16x8xf32>
    %45 = tpu.matmul %1, %44, %cst_38 {dimension_numbers = #tpu.dot_dimension_numbers<[1], [0], [0], [1], [0, 0, 1, 1], [], []>} : vector<16x32xf32>, vector<32x8xf32>, vector<16x8xf32> -> vector<16x8xf32>
    %46 = vector.shape_cast %39 : vector<16x8xf32> to vector<2x8x8xf32>
    %47 = vector.shape_cast %42 : vector<16x8xf32> to vector<2x8x8xf32>
    "tpu.trace_start"() <{level = 10 : i32, message = "bqd,bkd->bqk"}> : () -> ()
    %cst_39 = arith.constant dense<0.000000e+00> : vector<2x8x8xf32>
    %48 = tpu.matmul %46, %47, %cst_39 {dimension_numbers = #tpu.dot_dimension_numbers<[2], [2], [1], [1], [0, 0, 0, 1, 1, 1], [0], [0]>} : vector<2x8x8xf32>, vector<2x8x8xf32>, vector<2x8x8xf32> -> vector<2x8x8xf32>
    %cst_40 = arith.constant -1.000000e+09 : f32
    "tpu.trace_stop"() : () -> ()
    %49 = vector.broadcast %cst_40 : f32 to vector<2x8x8xf32>
    %50 = arith.select %4, %49, %48 : vector<2x8x8xi1>, vector<2x8x8xf32>
    %cst_41 = arith.constant dense<0xFF800000> : vector<2x8xf32>
    %51 = vector.multi_reduction <maximumf>, %50, %cst_41 [2] : vector<2x8x8xf32> to vector<2x8xf32>
    %52 = vector.shape_cast %51 : vector<2x8xf32> to vector<2x8x1xf32>
    %53 = vector.broadcast %52 : vector<2x8x1xf32> to vector<2x8x8xf32>
    %54 = arith.subf %50, %53 : vector<2x8x8xf32>
    %55 = math.exp %54 : vector<2x8x8xf32>
    %cst_42 = arith.constant dense<0.000000e+00> : vector<2x8xf32>
    %56 = vector.multi_reduction <add>, %55, %cst_42 [2] : vector<2x8x8xf32> to vector<2x8xf32>
    %57 = vector.shape_cast %56 : vector<2x8xf32> to vector<2x8x1xf32>
    %58 = tpu.reciprocal %57 : vector<2x8x1xf32> -> vector<2x8x1xf32>
    %59 = vector.broadcast %58 : vector<2x8x1xf32> to vector<2x8x8xf32>
    %60 = arith.mulf %55, %59 : vector<2x8x8xf32>
    %61 = vector.shape_cast %45 : vector<16x8xf32> to vector<2x8x8xf32>
    "tpu.trace_start"() <{level = 10 : i32, message = "bqk,bkd->bqd"}> : () -> ()
    %cst_43 = arith.constant dense<0.000000e+00> : vector<2x8x8xf32>
    %62 = tpu.matmul %60, %61, %cst_43 {dimension_numbers = #tpu.dot_dimension_numbers<[2], [1], [1], [2], [0, 0, 0, 1, 1, 2], [0], [0]>} : vector<2x8x8xf32>, vector<2x8x8xf32>, vector<2x8x8xf32> -> vector<2x8x8xf32>
    "tpu.trace_stop"() : () -> ()
    %63 = vector.shape_cast %62 : vector<2x8x8xf32> to vector<16x8xf32>
    %c1_44 = arith.constant 1 : index
    %c0_45 = arith.constant 0 : index
    %c0_46 = arith.constant 0 : index
    %64 = vector.load %arg7[%c1_44, %c0_45, %c0_46] : memref<4x8x32xf32, #tpu.memory_space<vmem>>, vector<1x8x32xf32>
    %65 = vector.shape_cast %64 : vector<1x8x32xf32> to vector<8x32xf32>
    %cst_47 = arith.constant dense<0.000000e+00> : vector<16x32xf32>
    %66 = tpu.matmul %63, %65, %cst_47 {dimension_numbers = #tpu.dot_dimension_numbers<[1], [0], [0], [1], [0, 0, 1, 1], [], []>} : vector<16x8xf32>, vector<8x32xf32>, vector<16x32xf32> -> vector<16x32xf32>
    %67 = arith.addf %36, %66 : vector<16x32xf32>
    %c2 = arith.constant 2 : index
    %c0_48 = arith.constant 0 : index
    %c0_49 = arith.constant 0 : index
    %68 = vector.load %arg4[%c2, %c0_48, %c0_49] : memref<4x32x8xf32, #tpu.memory_space<vmem>>, vector<1x32x8xf32>
    %69 = vector.shape_cast %68 : vector<1x32x8xf32> to vector<32x8xf32>
    %cst_50 = arith.constant dense<0.000000e+00> : vector<16x8xf32>
    %70 = tpu.matmul %0, %69, %cst_50 {dimension_numbers = #tpu.dot_dimension_numbers<[1], [0], [0], [1], [0, 0, 1, 1], [], []>} : vector<16x32xf32>, vector<32x8xf32>, vector<16x8xf32> -> vector<16x8xf32>
    %c2_51 = arith.constant 2 : index
    %c0_52 = arith.constant 0 : index
    %c0_53 = arith.constant 0 : index
    %71 = vector.load %arg5[%c2_51, %c0_52, %c0_53] : memref<4x32x8xf32, #tpu.memory_space<vmem>>, vector<1x32x8xf32>
    %72 = vector.shape_cast %71 : vector<1x32x8xf32> to vector<32x8xf32>
    %cst_54 = arith.constant dense<0.000000e+00> : vector<16x8xf32>
    %73 = tpu.matmul %1, %72, %cst_54 {dimension_numbers = #tpu.dot_dimension_numbers<[1], [0], [0], [1], [0, 0, 1, 1], [], []>} : vector<16x32xf32>, vector<32x8xf32>, vector<16x8xf32> -> vector<16x8xf32>
    %c2_55 = arith.constant 2 : index
    %c0_56 = arith.constant 0 : index
    %c0_57 = arith.constant 0 : index
    %74 = vector.load %arg6[%c2_55, %c0_56, %c0_57] : memref<4x32x8xf32, #tpu.memory_space<vmem>>, vector<1x32x8xf32>
    %75 = vector.shape_cast %74 : vector<1x32x8xf32> to vector<32x8xf32>
    %cst_58 = arith.constant dense<0.000000e+00> : vector<16x8xf32>
    %76 = tpu.matmul %1, %75, %cst_58 {dimension_numbers = #tpu.dot_dimension_numbers<[1], [0], [0], [1], [0, 0, 1, 1], [], []>} : vector<16x32xf32>, vector<32x8xf32>, vector<16x8xf32> -> vector<16x8xf32>
    %77 = vector.shape_cast %70 : vector<16x8xf32> to vector<2x8x8xf32>
    %78 = vector.shape_cast %73 : vector<16x8xf32> to vector<2x8x8xf32>
    "tpu.trace_start"() <{level = 10 : i32, message = "bqd,bkd->bqk"}> : () -> ()
    %cst_59 = arith.constant dense<0.000000e+00> : vector<2x8x8xf32>
    %79 = tpu.matmul %77, %78, %cst_59 {dimension_numbers = #tpu.dot_dimension_numbers<[2], [2], [1], [1], [0, 0, 0, 1, 1, 1], [0], [0]>} : vector<2x8x8xf32>, vector<2x8x8xf32>, vector<2x8x8xf32> -> vector<2x8x8xf32>
    %cst_60 = arith.constant -1.000000e+09 : f32
    "tpu.trace_stop"() : () -> ()
    %80 = vector.broadcast %cst_60 : f32 to vector<2x8x8xf32>
    %81 = arith.select %4, %80, %79 : vector<2x8x8xi1>, vector<2x8x8xf32>
    %cst_61 = arith.constant dense<0xFF800000> : vector<2x8xf32>
    %82 = vector.multi_reduction <maximumf>, %81, %cst_61 [2] : vector<2x8x8xf32> to vector<2x8xf32>
    %83 = vector.shape_cast %82 : vector<2x8xf32> to vector<2x8x1xf32>
    %84 = vector.broadcast %83 : vector<2x8x1xf32> to vector<2x8x8xf32>
    %85 = arith.subf %81, %84 : vector<2x8x8xf32>
    %86 = math.exp %85 : vector<2x8x8xf32>
    %cst_62 = arith.constant dense<0.000000e+00> : vector<2x8xf32>
    %87 = vector.multi_reduction <add>, %86, %cst_62 [2] : vector<2x8x8xf32> to vector<2x8xf32>
    %88 = vector.shape_cast %87 : vector<2x8xf32> to vector<2x8x1xf32>
    %89 = tpu.reciprocal %88 : vector<2x8x1xf32> -> vector<2x8x1xf32>
    %90 = vector.broadcast %89 : vector<2x8x1xf32> to vector<2x8x8xf32>
    %91 = arith.mulf %86, %90 : vector<2x8x8xf32>
    %92 = vector.shape_cast %76 : vector<16x8xf32> to vector<2x8x8xf32>
    "tpu.trace_start"() <{level = 10 : i32, message = "bqk,bkd->bqd"}> : () -> ()
    %cst_63 = arith.constant dense<0.000000e+00> : vector<2x8x8xf32>
    %93 = tpu.matmul %91, %92, %cst_63 {dimension_numbers = #tpu.dot_dimension_numbers<[2], [1], [1], [2], [0, 0, 0, 1, 1, 2], [0], [0]>} : vector<2x8x8xf32>, vector<2x8x8xf32>, vector<2x8x8xf32> -> vector<2x8x8xf32>
    "tpu.trace_stop"() : () -> ()
    %94 = vector.shape_cast %93 : vector<2x8x8xf32> to vector<16x8xf32>
    %c2_64 = arith.constant 2 : index
    %c0_65 = arith.constant 0 : index
    %c0_66 = arith.constant 0 : index
    %95 = vector.load %arg7[%c2_64, %c0_65, %c0_66] : memref<4x8x32xf32, #tpu.memory_space<vmem>>, vector<1x8x32xf32>
    %96 = vector.shape_cast %95 : vector<1x8x32xf32> to vector<8x32xf32>
    %cst_67 = arith.constant dense<0.000000e+00> : vector<16x32xf32>
    %97 = tpu.matmul %94, %96, %cst_67 {dimension_numbers = #tpu.dot_dimension_numbers<[1], [0], [0], [1], [0, 0, 1, 1], [], []>} : vector<16x8xf32>, vector<8x32xf32>, vector<16x32xf32> -> vector<16x32xf32>
    %98 = arith.addf %67, %97 : vector<16x32xf32>
    %c3 = arith.constant 3 : index
    %c0_68 = arith.constant 0 : index
    %c0_69 = arith.constant 0 : index
    %99 = vector.load %arg4[%c3, %c0_68, %c0_69] : memref<4x32x8xf32, #tpu.memory_space<vmem>>, vector<1x32x8xf32>
    %100 = vector.shape_cast %99 : vector<1x32x8xf32> to vector<32x8xf32>
    %cst_70 = arith.constant dense<0.000000e+00> : vector<16x8xf32>
    %101 = tpu.matmul %0, %100, %cst_70 {dimension_numbers = #tpu.dot_dimension_numbers<[1], [0], [0], [1], [0, 0, 1, 1], [], []>} : vector<16x32xf32>, vector<32x8xf32>, vector<16x8xf32> -> vector<16x8xf32>
    %c3_71 = arith.constant 3 : index
    %c0_72 = arith.constant 0 : index
    %c0_73 = arith.constant 0 : index
    %102 = vector.load %arg5[%c3_71, %c0_72, %c0_73] : memref<4x32x8xf32, #tpu.memory_space<vmem>>, vector<1x32x8xf32>
    %103 = vector.shape_cast %102 : vector<1x32x8xf32> to vector<32x8xf32>
    %cst_74 = arith.constant dense<0.000000e+00> : vector<16x8xf32>
    %104 = tpu.matmul %1, %103, %cst_74 {dimension_numbers = #tpu.dot_dimension_numbers<[1], [0], [0], [1], [0, 0, 1, 1], [], []>} : vector<16x32xf32>, vector<32x8xf32>, vector<16x8xf32> -> vector<16x8xf32>
    %c3_75 = arith.constant 3 : index
    %c0_76 = arith.constant 0 : index
    %c0_77 = arith.constant 0 : index
    %105 = vector.load %arg6[%c3_75, %c0_76, %c0_77] : memref<4x32x8xf32, #tpu.memory_space<vmem>>, vector<1x32x8xf32>
    %106 = vector.shape_cast %105 : vector<1x32x8xf32> to vector<32x8xf32>
    %cst_78 = arith.constant dense<0.000000e+00> : vector<16x8xf32>
    %107 = tpu.matmul %1, %106, %cst_78 {dimension_numbers = #tpu.dot_dimension_numbers<[1], [0], [0], [1], [0, 0, 1, 1], [], []>} : vector<16x32xf32>, vector<32x8xf32>, vector<16x8xf32> -> vector<16x8xf32>
    %108 = vector.shape_cast %101 : vector<16x8xf32> to vector<2x8x8xf32>
    %109 = vector.shape_cast %104 : vector<16x8xf32> to vector<2x8x8xf32>
    "tpu.trace_start"() <{level = 10 : i32, message = "bqd,bkd->bqk"}> : () -> ()
    %cst_79 = arith.constant dense<0.000000e+00> : vector<2x8x8xf32>
    %110 = tpu.matmul %108, %109, %cst_79 {dimension_numbers = #tpu.dot_dimension_numbers<[2], [2], [1], [1], [0, 0, 0, 1, 1, 1], [0], [0]>} : vector<2x8x8xf32>, vector<2x8x8xf32>, vector<2x8x8xf32> -> vector<2x8x8xf32>
    %cst_80 = arith.constant -1.000000e+09 : f32
    "tpu.trace_stop"() : () -> ()
    %111 = vector.broadcast %cst_80 : f32 to vector<2x8x8xf32>
    %112 = arith.select %4, %111, %110 : vector<2x8x8xi1>, vector<2x8x8xf32>
    %cst_81 = arith.constant dense<0xFF800000> : vector<2x8xf32>
    %113 = vector.multi_reduction <maximumf>, %112, %cst_81 [2] : vector<2x8x8xf32> to vector<2x8xf32>
    %114 = vector.shape_cast %113 : vector<2x8xf32> to vector<2x8x1xf32>
    %115 = vector.broadcast %114 : vector<2x8x1xf32> to vector<2x8x8xf32>
    %116 = arith.subf %112, %115 : vector<2x8x8xf32>
    %117 = math.exp %116 : vector<2x8x8xf32>
    %cst_82 = arith.constant dense<0.000000e+00> : vector<2x8xf32>
    %118 = vector.multi_reduction <add>, %117, %cst_82 [2] : vector<2x8x8xf32> to vector<2x8xf32>
    %119 = vector.shape_cast %118 : vector<2x8xf32> to vector<2x8x1xf32>
    %120 = tpu.reciprocal %119 : vector<2x8x1xf32> -> vector<2x8x1xf32>
    %121 = vector.broadcast %120 : vector<2x8x1xf32> to vector<2x8x8xf32>
    %122 = arith.mulf %117, %121 : vector<2x8x8xf32>
    %123 = vector.shape_cast %107 : vector<16x8xf32> to vector<2x8x8xf32>
    "tpu.trace_start"() <{level = 10 : i32, message = "bqk,bkd->bqd"}> : () -> ()
    %cst_83 = arith.constant dense<0.000000e+00> : vector<2x8x8xf32>
    %124 = tpu.matmul %122, %123, %cst_83 {dimension_numbers = #tpu.dot_dimension_numbers<[2], [1], [1], [2], [0, 0, 0, 1, 1, 2], [0], [0]>} : vector<2x8x8xf32>, vector<2x8x8xf32>, vector<2x8x8xf32> -> vector<2x8x8xf32>
    "tpu.trace_stop"() : () -> ()
    %125 = vector.shape_cast %124 : vector<2x8x8xf32> to vector<16x8xf32>
    %c3_84 = arith.constant 3 : index
    %c0_85 = arith.constant 0 : index
    %c0_86 = arith.constant 0 : index
    %126 = vector.load %arg7[%c3_84, %c0_85, %c0_86] : memref<4x8x32xf32, #tpu.memory_space<vmem>>, vector<1x8x32xf32>
    %127 = vector.shape_cast %126 : vector<1x8x32xf32> to vector<8x32xf32>
    %cst_87 = arith.constant dense<0.000000e+00> : vector<16x32xf32>
    %128 = tpu.matmul %125, %127, %cst_87 {dimension_numbers = #tpu.dot_dimension_numbers<[1], [0], [0], [1], [0, 0, 1, 1], [], []>} : vector<16x8xf32>, vector<8x32xf32>, vector<16x32xf32> -> vector<16x32xf32>
    %129 = arith.addf %98, %128 : vector<16x32xf32>
    %130 = vector.shape_cast %29 : vector<2x8x8xf32> to vector<2x1x8x8xf32>
    %131 = vector.shape_cast %60 : vector<2x8x8xf32> to vector<2x1x8x8xf32>
    %132 = vector.shape_cast %91 : vector<2x8x8xf32> to vector<2x1x8x8xf32>
    %133 = vector.shape_cast %122 : vector<2x8x8xf32> to vector<2x1x8x8xf32>
    %134 = tpu.concatenate %130, %131, %132, %133 in 1 : vector<2x1x8x8xf32>, vector<2x1x8x8xf32>, vector<2x1x8x8xf32>, vector<2x1x8x8xf32> -> vector<2x4x8x8xf32>
    %c0_88 = arith.constant 0 : index
    %c0_89 = arith.constant 0 : index
    %c0_90 = arith.constant 0 : index
    %c0_91 = arith.constant 0 : index
    %135 = vector.load %arg17[%c0_88, %c0_89, %c0_90, %c0_91] : memref<2x4x8x8xf32, #tpu.memory_space<vmem>>, vector<2x4x8x8xf32>
    tpu.vector_store %arg17[%c0_88, %c0_89, %c0_90, %c0_91], %134 {strides = array<i32>} : memref<2x4x8x8xf32, #tpu.memory_space<vmem>>, vector<2x4x8x8xf32>,
    %136 = arith.addf %129, %0 : vector<16x32xf32>
    %c0_92 = arith.constant 0 : index
    %c0_93 = arith.constant 0 : index
    %137 = vector.load %arg8[%c0_92, %c0_93] : memref<1x32xf32, #tpu.memory_space<vmem>>, vector<1x32xf32>
    %c0_94 = arith.constant 0 : index
    %c0_95 = arith.constant 0 : index
    %138 = vector.load %arg9[%c0_94, %c0_95] : memref<1x32xf32, #tpu.memory_space<vmem>>, vector<1x32xf32>
    %cst_96 = arith.constant dense<0.000000e+00> : vector<16xf32>
    %139 = vector.multi_reduction <add>, %136, %cst_96 [1] : vector<16x32xf32> to vector<16xf32>
    %140 = vector.shape_cast %139 : vector<16xf32> to vector<16x1xf32>
    %cst_97 = arith.constant 3.200000e+01 : f32
    %141 = vector.broadcast %cst_97 : f32 to vector<16x1xf32>
    %142 = arith.divf %140, %141 : vector<16x1xf32>
    %143 = vector.broadcast %142 : vector<16x1xf32> to vector<16x32xf32>
    %144 = arith.subf %136, %143 : vector<16x32xf32>
    %145 = arith.mulf %144, %144 : vector<16x32xf32>
    %cst_98 = arith.constant dense<0.000000e+00> : vector<16xf32>
    %146 = vector.multi_reduction <add>, %145, %cst_98 [1] : vector<16x32xf32> to vector<16xf32>
    %147 = vector.shape_cast %146 : vector<16xf32> to vector<16x1xf32>
    %cst_99 = arith.constant 3.200000e+01 : f32
    %148 = vector.broadcast %cst_99 : f32 to vector<16x1xf32>
    %149 = arith.divf %147, %148 : vector<16x1xf32>
    %150 = vector.broadcast %142 : vector<16x1xf32> to vector<16x32xf32>
    %151 = arith.subf %136, %150 : vector<16x32xf32>
    %cst_100 = arith.constant 9.99999997E-7 : f32
    %152 = vector.broadcast %cst_100 : f32 to vector<16x1xf32>
    %153 = arith.addf %149, %152 : vector<16x1xf32>
    %154 = math.rsqrt %153 : vector<16x1xf32>
    %155 = vector.broadcast %154 : vector<16x1xf32> to vector<16x32xf32>
    %156 = arith.mulf %151, %155 : vector<16x32xf32>
    %157 = vector.broadcast %137 : vector<1x32xf32> to vector<16x32xf32>
    %158 = arith.mulf %156, %157 : vector<16x32xf32>
    %159 = vector.broadcast %138 : vector<1x32xf32> to vector<16x32xf32>
    %160 = arith.addf %158, %159 : vector<16x32xf32>
    %c0_101 = arith.constant 0 : index
    %c0_102 = arith.constant 0 : index
    %161 = vector.load %arg10[%c0_101, %c0_102] : memref<32x64xf32, #tpu.memory_space<vmem>>, vector<32x64xf32>
    %cst_103 = arith.constant dense<0.000000e+00> : vector<16x64xf32>
    %162 = tpu.matmul %160, %161, %cst_103 {dimension_numbers = #tpu.dot_dimension_numbers<[1], [0], [0], [1], [0, 0, 1, 1], [], []>} : vector<16x32xf32>, vector<32x64xf32>, vector<16x64xf32> -> vector<16x64xf32>
    %c0_104 = arith.constant 0 : index
    %c0_105 = arith.constant 0 : index
    %163 = vector.load %arg11[%c0_104, %c0_105] : memref<1x64xf32, #tpu.memory_space<vmem>>, vector<1x64xf32>
    %164 = vector.broadcast %163 : vector<1x64xf32> to vector<16x64xf32>
    %165 = arith.addf %162, %164 : vector<16x64xf32>
    %cst_106 = arith.constant 0.000000e+00 : f32
    %166 = vector.broadcast %cst_106 : f32 to vector<16x64xf32>
    %167 = arith.maximumf %165, %166 : vector<16x64xf32>
    %c0_107 = arith.constant 0 : index
    %c0_108 = arith.constant 0 : index
    %168 = vector.load %arg12[%c0_107, %c0_108] : memref<64x32xf32, #tpu.memory_space<vmem>>, vector<64x32xf32>
    %cst_109 = arith.constant dense<0.000000e+00> : vector<16x32xf32>
    %169 = tpu.matmul %167, %168, %cst_109 {dimension_numbers = #tpu.dot_dimension_numbers<[1], [0], [0], [1], [0, 0, 1, 1], [], []>} : vector<16x64xf32>, vector<64x32xf32>, vector<16x32xf32> -> vector<16x32xf32>
    %c0_110 = arith.constant 0 : index
    %c0_111 = arith.constant 0 : index
    %170 = vector.load %arg13[%c0_110, %c0_111] : memref<1x32xf32, #tpu.memory_space<vmem>>, vector<1x32xf32>
    %171 = vector.broadcast %170 : vector<1x32xf32> to vector<16x32xf32>
    %172 = arith.addf %169, %171 : vector<16x32xf32>
    %173 = arith.addf %172, %160 : vector<16x32xf32>
    %c0_112 = arith.constant 0 : index
    %c0_113 = arith.constant 0 : index
    %174 = vector.load %arg14[%c0_112, %c0_113] : memref<1x32xf32, #tpu.memory_space<vmem>>, vector<1x32xf32>
    %c0_114 = arith.constant 0 : index
    %c0_115 = arith.constant 0 : index
    %175 = vector.load %arg15[%c0_114, %c0_115] : memref<1x32xf32, #tpu.memory_space<vmem>>, vector<1x32xf32>
    %cst_116 = arith.constant dense<0.000000e+00> : vector<16xf32>
    %176 = vector.multi_reduction <add>, %173, %cst_116 [1] : vector<16x32xf32> to vector<16xf32>
    %177 = vector.shape_cast %176 : vector<16xf32> to vector<16x1xf32>
    %cst_117 = arith.constant 3.200000e+01 : f32
    %178 = vector.broadcast %cst_117 : f32 to vector<16x1xf32>
    %179 = arith.divf %177, %178 : vector<16x1xf32>
    %180 = vector.broadcast %179 : vector<16x1xf32> to vector<16x32xf32>
    %181 = arith.subf %173, %180 : vector<16x32xf32>
    %182 = arith.mulf %181, %181 : vector<16x32xf32>
    %cst_118 = arith.constant dense<0.000000e+00> : vector<16xf32>
    %183 = vector.multi_reduction <add>, %182, %cst_118 [1] : vector<16x32xf32> to vector<16xf32>
    %184 = vector.shape_cast %183 : vector<16xf32> to vector<16x1xf32>
    %cst_119 = arith.constant 3.200000e+01 : f32
    %185 = vector.broadcast %cst_119 : f32 to vector<16x1xf32>
    %186 = arith.divf %184, %185 : vector<16x1xf32>
    %187 = vector.broadcast %179 : vector<16x1xf32> to vector<16x32xf32>
    %188 = arith.subf %173, %187 : vector<16x32xf32>
    %cst_120 = arith.constant 9.99999997E-7 : f32
    %189 = vector.broadcast %cst_120 : f32 to vector<16x1xf32>
    %190 = arith.addf %186, %189 : vector<16x1xf32>
    %191 = math.rsqrt %190 : vector<16x1xf32>
    %192 = vector.broadcast %191 : vector<16x1xf32> to vector<16x32xf32>
    %193 = arith.mulf %188, %192 : vector<16x32xf32>
    %194 = vector.broadcast %174 : vector<1x32xf32> to vector<16x32xf32>
    %195 = arith.mulf %193, %194 : vector<16x32xf32>
    %196 = vector.broadcast %175 : vector<1x32xf32> to vector<16x32xf32>
    %197 = arith.addf %195, %196 : vector<16x32xf32>
    %c0_121 = arith.constant 0 : index
    %c0_122 = arith.constant 0 : index
    %198 = vector.load %arg16[%c0_121, %c0_122] : memref<16x32xf32, #tpu.memory_space<vmem>>, vector<16x32xf32>
    tpu.vector_store %arg16[%c0_121, %c0_122], %197 {strides = array<i32>} : memref<16x32xf32, #tpu.memory_space<vmem>>, vector<16x32xf32>,
    return
  }
  func.func @transform_0(%arg0: i32) -> (i32, i32) {
    %c0_i32 = arith.constant 0 : i32
    %c0_i32_0 = arith.constant 0 : i32
    return %arg0, %c0_i32 : i32, i32
  }
  func.func @transform_1(%arg0: i32) -> (i32, i32) {
    %c0_i32 = arith.constant 0 : i32
    %c0_i32_0 = arith.constant 0 : i32
    return %arg0, %c0_i32 : i32, i32
  }
  func.func @transform_2(%arg0: i32) -> (i32, i32, i32) {
    %c0_i32 = arith.constant 0 : i32
    %c0_i32_0 = arith.constant 0 : i32
    %c0_i32_1 = arith.constant 0 : i32
    return %arg0, %c0_i32, %c0_i32_0 : i32, i32, i32
  }
  func.func @transform_3(%arg0: i32) -> (i32, i32, i32) {
    %c0_i32 = arith.constant 0 : i32
    %c0_i32_0 = arith.constant 0 : i32
    %c0_i32_1 = arith.constant 0 : i32
    %c0_i32_2 = arith.constant 0 : i32
    return %c0_i32, %c0_i32_0, %c0_i32_1 : i32, i32, i32
  }
  func.func @transform_4(%arg0: i32) -> (i32, i32, i32) {
    %c0_i32 = arith.constant 0 : i32
    %c0_i32_0 = arith.constant 0 : i32
    %c0_i32_1 = arith.constant 0 : i32
    %c0_i32_2 = arith.constant 0 : i32
    return %c0_i32, %c0_i32_0, %c0_i32_1 : i32, i32, i32
  }
  func.func @transform_5(%arg0: i32) -> (i32, i32, i32) {
    %c0_i32 = arith.constant 0 : i32
    %c0_i32_0 = arith.constant 0 : i32
    %c0_i32_1 = arith.constant 0 : i32
    %c0_i32_2 = arith.constant 0 : i32
    return %c0_i32, %c0_i32_0, %c0_i32_1 : i32, i32, i32
  }
  func.func @transform_6(%arg0: i32) -> (i32, i32, i32) {
    %c0_i32 = arith.constant 0 : i32
    %c0_i32_0 = arith.constant 0 : i32
    %c0_i32_1 = arith.constant 0 : i32
    %c0_i32_2 = arith.constant 0 : i32
    return %c0_i32, %c0_i32_0, %c0_i32_1 : i32, i32, i32
  }
  func.func @transform_7(%arg0: i32) -> (i32, i32) {
    %c0_i32 = arith.constant 0 : i32
    %c0_i32_0 = arith.constant 0 : i32
    %c0_i32_1 = arith.constant 0 : i32
    return %c0_i32, %c0_i32_0 : i32, i32
  }
  func.func @transform_8(%arg0: i32) -> (i32, i32) {
    %c0_i32 = arith.constant 0 : i32
    %c0_i32_0 = arith.constant 0 : i32
    %c0_i32_1 = arith.constant 0 : i32
    return %c0_i32, %c0_i32_0 : i32, i32
  }
  func.func @transform_9(%arg0: i32) -> (i32, i32) {
    %c0_i32 = arith.constant 0 : i32
    %c0_i32_0 = arith.constant 0 : i32
    %c0_i32_1 = arith.constant 0 : i32
    return %c0_i32, %c0_i32_0 : i32, i32
  }
  func.func @transform_10(%arg0: i32) -> (i32, i32) {
    %c0_i32 = arith.constant 0 : i32
    %c0_i32_0 = arith.constant 0 : i32
    %c0_i32_1 = arith.constant 0 : i32
    return %c0_i32, %c0_i32_0 : i32, i32
  }
  func.func @transform_11(%arg0: i32) -> (i32, i32) {
    %c0_i32 = arith.constant 0 : i32
    %c0_i32_0 = arith.constant 0 : i32
    %c0_i32_1 = arith.constant 0 : i32
    return %c0_i32, %c0_i32_0 : i32, i32
  }
  func.func @transform_12(%arg0: i32) -> (i32, i32) {
    %c0_i32 = arith.constant 0 : i32
    %c0_i32_0 = arith.constant 0 : i32
    %c0_i32_1 = arith.constant 0 : i32
    return %c0_i32, %c0_i32_0 : i32, i32
  }
  func.func @transform_13(%arg0: i32) -> (i32, i32) {
    %c0_i32 = arith.constant 0 : i32
    %c0_i32_0 = arith.constant 0 : i32
    %c0_i32_1 = arith.constant 0 : i32
    return %c0_i32, %c0_i32_0 : i32, i32
  }
  func.func @transform_14(%arg0: i32) -> (i32, i32) {
    %c0_i32 = arith.constant 0 : i32
    %c0_i32_0 = arith.constant 0 : i32
    %c0_i32_1 = arith.constant 0 : i32
    return %c0_i32, %c0_i32_0 : i32, i32
  }
  func.func @transform_15(%arg0: i32) -> (i32, i32) {
    %c0_i32 = arith.constant 0 : i32
    %c0_i32_0 = arith.constant 0 : i32
    return %arg0, %c0_i32 : i32, i32
  }
  func.func @transform_16(%arg0: i32) -> (i32, i32, i32, i32) {
    %c0_i32 = arith.constant 0 : i32
    %c0_i32_0 = arith.constant 0 : i32
    %c0_i32_1 = arith.constant 0 : i32
    %c0_i32_2 = arith.constant 0 : i32
    return %arg0, %c0_i32, %c0_i32_0, %c0_i32_1 : i32, i32, i32, i32
  }
}

</mosaic_0001>

<bundles_post_ra>
// kernel: tpu_custom_call.1
= control target key start
LH: loop header
LB: loop body
LE: loop exit
PB: predicated region body
PF: predicated region fallthrough
CT: control target
= control target key end

     0   :  { %s4252_s0 = inlined_call_operand.vmem [shape: f32[16,32], index: 0, kind: input, shape index: {}]   ;;  %s4253_s1 = inlined_call_operand.vmem [shape: f32[16,32], index: 1, kind: input, shape index: {}]   ;;  %s4254_s2 = inlined_call_operand.vmem [shape: f32[2,8,8], index: 2, kind: input, shape index: {}]   ;;  %s4255_s3 = inlined_call_operand.vmem [shape: f32[4,32,8], index: 3, kind: input, shape index: {}]   ;;  %s4256_s4 = inlined_call_operand.vmem [shape: f32[4,32,8], index: 4, kind: input, shape index: {}]   ;;  %s4257_s5 = inlined_call_operand.vmem [shape: f32[4,32,8], index: 5, kind: input, shape index: {}]   ;;  %s4258_s6 = inlined_call_operand.vmem [shape: f32[4,8,32], index: 6, kind: input, shape index: {}]   ;;  %s4259_s7 = inlined_call_operand.vmem [shape: f32[1,32], index: 7, kind: input, shape index: {}]   ;;  %s4260_s8 = inlined_call_operand.vmem [shape: f32[1,32], index: 8, kind: input, shape index: {}]   ;;  %s4261_s9 = inlined_call_operand.vmem [shape: f32[32,64], index: 9, kind: input, shape index: {}]   ;;  %s4262_s10 = inlined_call_operand.vmem [shape: f32[1,64], index: 10, kind: input, shape index: {}]   ;;  %s4263_s11 = inlined_call_operand.vmem [shape: f32[64,32], index: 11, kind: input, shape index: {}]   ;;  %s4264_s12 = inlined_call_operand.vmem [shape: f32[1,32], index: 12, kind: input, shape index: {}]   ;;  %s4265_s13 = inlined_call_operand.vmem [shape: f32[1,32], index: 13, kind: input, shape index: {}]   ;;  %s4266_s14 = inlined_call_operand.vmem [shape: f32[1,32], index: 14, kind: input, shape index: {}]   ;;  %s4267_s15 = inlined_call_operand.hbm [shape: f32[16,32], index: 15, kind: output, shape index: {0}]   ;;  %s4268_s16 = inlined_call_operand.hbm [shape: f32[2,4,8,8], index: 16, kind: output, shape index: {1}]  }
   0x1   :  { %4270 = sst [smem:[#allocation8_spill]] %s4252_s0 }
   0x2   :  { %22 = vsyncpa [#allocation3], 0  ;;  %v62_v0 = vld [vmem:[%s4255_s3] sm:$0xff]  ;;  %v63_v1 = vld [vmem:[%s4255_s3 + $0x8] sm:$0xff]  ;;  %vm66_vm0 = vcmask 261120   ;;  %s4271_s0 = sld [smem:[#allocation8_spill]] }
   0x3   :  { %v64_v2 = vld [vmem:[%s4255_s3 + $0x10] sm:$0xff]  ;;  %v3481_v3 = vpack.c.bf16 %v63_v1, %v62_v0  ;;  %v65_v4 = vld [vmem:[%s4255_s3 + $0x18] sm:$0xff]  ;;  %v148_v7 = vld [vmem:[%s4256_s4] sm:$0xff] }
   0x4   :  { %v3485_v6 = vpack.c.bf16 %v65_v4, %v64_v2  ;;  %v149_v8 = vld [vmem:[%s4256_s4 + $0x8] sm:$0xff]  ;;  %v3820_v9 = vld [vmem:[%s4253_s1] sm:$0xff] }
   0x5   :  { %3482 = vmatprep.subr.bf16.mxu1 %v3481_v3  ;;  %3249 = vmatprep.mubr.msk.f32.mxu0 %vm66_vm0, %v3820_v9 }
   0x6   :  { %3484 = vmatpush3.bf16.msra.mxu1 %v3481_v3 }
   0x8   :  { %v3807_v5 = vld [vmem:[%s4271_s0] sm:$0xff] }
   0x9   :  { %3227 = vmatprep.mubr.msk.f32.mxu1 %vm66_vm0, %v3807_v5 }
   0xa   :  { %23 = vsyncpa [#allocation5], 0  ;;  %3486 = vmatprep.subr.bf16.mxu1 %v3485_v6  ;;  %v3489_v10 = vpack.c.bf16 %v149_v8, %v148_v7  ;;  %v150_v11 = vld [vmem:[%s4256_s4 + $0x10] sm:$0xff]  ;;  %v151_v12 = vld [vmem:[%s4256_s4 + $0x18] sm:$0xff]  ;;  %v3701_v16 = vmov 0.0   ;;  %vm3702_vm1 = vmmov 0  }
   0xb   :  { %3488 = vmatpush3.bf16.msra.mxu1 %v3485_v6  ;;  %v3833_v13 = vld [vmem:[%s4271_s0 + $0x8] sm:$0xff]  ;;  %v3493_v14 = vpack.c.bf16 %v151_v12, %v150_v11  ;;  %vm312_vm2 = vcmask 64512   ;;  %v233_v21 = vld [vmem:[%s4257_s5] sm:$0xff]  ;;  %v235_v23 = vld [vmem:[%s4257_s5 + $0x10] sm:$0xff]  ;;  %vm2820_vm5 = vcmask 523264  }
   0xc   :  { %3490 = vmatprep.subr.bf16.mxu1 %v3489_v10  ;;  %v3842_v15 = vld [vmem:[%s4253_s1 + $0x8] sm:$0xff]  ;;  %v236_v25 = vld [vmem:[%s4257_s5 + $0x18] sm:$0xff]  ;;  %v3884_v29 = vld [vmem:[%s4254_s2] sm:$0xff] }
   0xd   :  { %v234_v22 = vld [vmem:[%s4257_s5 + $0x8] sm:$0xff]  ;;  %v3501_v26 = vpack.c.bf16 %v236_v25, %v235_v23  ;;  %vm60_vm4 = vcmp.eq.f32.partialorder %v3884_v29, 0.0  ;;  %v3000_v47 = vld [vmem:[%s4256_s4 + $0x20] sm:$0xff]  ;;  %v3002_v57 = vld [vmem:[%s4256_s4 + $0x30] sm:$0xff] }
   0xe   :  { %3228 = vmatmul.mubr.msk.f32.vlgmr.msra.gmra.mrb[0].mxu1 %vm66_vm0, %v3833_v13  ;;  %v3497_v24 = vpack.c.bf16 %v234_v22, %v233_v21  ;;  %v3879_v27 = vld [vmem:[%s4254_s2 + $0x8] sm:$0xff]  ;;  %v2994_v52 = vld [vmem:[%s4255_s3 + $0x20] sm:$0xff]  ;;  %v3003_v58 = vld [vmem:[%s4256_s4 + $0x38] sm:$0xff] }
   0xf   :  { %3492 = vmatpush3.bf16.msra.mxu1 %v3489_v10  ;;  %3238 = vmatprep.mubr.msk.f32.mxu1 %vm66_vm0, %v3820_v9  ;;  %vm61_vm3 = vcmp.eq.f32.partialorder %v3879_v27, 0.0  ;;  %v3001_v48 = vld [vmem:[%s4256_s4 + $0x28] sm:$0xff]  ;;  %v3517_v61 = vpack.c.bf16 %v3003_v58, %v3002_v57  ;;  %v2996_v62 = vld [vmem:[%s4255_s3 + $0x30] sm:$0xff]  ;;  %v2997_v63 = vld [vmem:[%s4255_s3 + $0x38] sm:$0xff] }
  0x10   :  { %3494 = vmatprep.subr.bf16.mxu1 %v3493_v14  ;;  %3498 = vmatprep.subr.bf16.mxu0 %v3497_v24  ;;  %v3513_v50 = vpack.c.bf16 %v3001_v48, %v3000_v47  ;;  %v2995_v53 = vld [vmem:[%s4255_s3 + $0x28] sm:$0xff]  ;;  %v3509_v2 = vpack.c.bf16 %v2997_v63, %v2996_v62  ;;  %v3035_v58 = vld [vmem:[%s4257_s5 + $0x40] sm:$0xff]  ;;  %v3038_v62 = vld [vmem:[%s4257_s5 + $0x58] sm:$0xff] }
  0x11   :  { %3500 = vmatpush3.bf16.msra.mxu0 %v3497_v24  ;;  %v3505_v54 = vpack.c.bf16 %v2995_v53, %v2994_v52  ;;  %v3023_v52 = vld [vmem:[%s4255_s3 + $0x40] sm:$0xff]  ;;  %v3024_v53 = vld [vmem:[%s4255_s3 + $0x48] sm:$0xff] }
  0x12   :  { %3502 = vmatprep.subr.bf16.mxu0 %v3501_v26 }
  0x13   :  { %3496 = vmatpush3.bf16.msra.mxu1 %v3493_v14  ;;  %v3006_v14 = vld [vmem:[%s4257_s5 + $0x20] sm:$0xff] }
  0x14   :  { %3252 = vmatprep.subr.mxu1 %v3701_v16 }
  0x15   :  { %3504 = vmatpush3.bf16.msra.mxu0 %v3501_v26 }
  0x16   :  { %3239 = vmatmul.mubr.msk.f32.vlgmr.msra.gmra.mrb[2].mxu1 %vm66_vm0, %v3842_v15  ;;  %3262 = vmatprep.subr.mxu0 %v3701_v16 }
  0x17   :  { %3254 = vmatprep.mubr.msk.f32.mxu1 %vm3702_vm1, %v3701_v16 }
  0x18   :  { %3250 = vmatmul.mubr.msk.f32.vlgmr.msra.gmra.mrb[0].mxu0 %vm66_vm0, %v3842_v15 }
  0x19   :  { %3264 = vmatprep.mubr.msk.f32.mxu0 %vm3702_vm1, %v3701_v16 }
  0xe1   :  { %v3229_v17 = vpop.f32.mrb[0].mxu1 }
  0xe2   :  { %v139_v18 = vpop.f32.mrb[1].mxu1 }
  0xe9   :  { %v3240_v19 = vpop.f32.mrb[2].mxu1 }
  0xea   :  { %v224_v20 = vpop.f32.mrb[3].mxu1 }
  0xeb   :  { %3253 = vmatpush3.xpose.msk.msra.mxu1 %vm312_vm2, %v224_v20  ;;  %v3251_v49 = vpop.f32.mrb[0].mxu0  ;;  %v3009_v20 = vld [vmem:[%s4257_s5 + $0x38] sm:$0xff] }
  0xec   :  { %3257 = vmatprep.subr.mxu1 %v3701_v16  ;;  %v303_v51 = vpop.f32.mrb[1].mxu0 }
  0xed   :  { %3263 = vmatpush3.msra.mxu0 %v303_v51  ;;  %v635_v51 = vld [vmem:[%s4258_s6] sm:$0xff] }
  0xee   :  { %3255 = vmatmul.mubr.msk.f32.vlgmr.msra.gmra.mrb[4].mxu1 %vm312_vm2, %v139_v18  ;;  %3506 = vmatprep.subr.bf16.mxu0 %v3505_v54  ;;  %v3008_v18 = vld [vmem:[%s4257_s5 + $0x30] sm:$0xff] }
  0xef   :  { %3258 = vmatpush3.xpose.msk.msra.mxu1 %vm312_vm2, %v3240_v19  ;;  %3259 = vmatprep.mubr.msk.f32.mxu1 %vm3702_vm1, %v3701_v16  ;;  %v3525_v21 = vpack.c.bf16 %v3009_v20, %v3008_v18 }
  0xf0   :  { %3267 = vmatprep.subr.mxu1 %v3701_v16 }
  0xf2   :  { %3260 = vmatmul.mubr.msk.f32.vlgmr.msra.gmra.mrb[6].mxu1 %vm312_vm2, %v3229_v17  ;;  %v3007_v17 = vld [vmem:[%s4257_s5 + $0x28] sm:$0xff] }
  0xf3   :  { %3269 = vmatprep.mubr.msk.f32.mxu1 %vm3702_vm1, %v3701_v16  ;;  %3268 = vmatpush3.msra.mxu1 %v3251_v49  ;;  %v3521_v19 = vpack.c.bf16 %v3007_v17, %v3006_v14 }
  0xf4   :  { %3514 = vmatprep.subr.bf16.mxu1 %v3513_v50 }
 0x1c1   :  { %v385_v28 = vpop.f32.mrb[4].mxu1 }
 0x1c2   :  { %v3256_v30 = vpop.f32.mrb[5].mxu1  ;;  %v465_v35 = vsel %vm60_vm4, -1e+09, %v385_v28 }
 0x1c3   :  { %v467_v36 = vsel %vm312_vm2, %v465_v35, -inf }
 0x1c5   :  { %v461_v31 = vpop.f32.mrb[6].mxu1 }
 0x1c6   :  { %v466_v32 = vsel %vm61_vm3, -1e+09, %v461_v31  ;;  %v3261_v33 = vpop.f32.mrb[7].mxu1 }
 0x1c7   :  { %v470_v34 = vsel %vm312_vm2, %v466_v32, -inf }
 0x1c8   :  { %471 = vmax.xlane.f32.xlu0 %v470_v34 }
 0x1cc   :  { %468 = vmax.xlane.f32.xlu0 %v467_v36 }
 0x255   :  { %v472_v37 = vpop.xlane.xlu0 %471 }
 0x256   :  { %v474_v38 = vsub.f32 %v466_v32, %v472_v37 }
 0x258   :  { %v477_v39 = vmul.f32 1.442695, %v474_v38 }
 0x259   :  { %v469_v40 = vpop.xlane.xlu0 %468 }
 0x25a   :  { %3613 = vpow2.f32 %v477_v39  ;;  %v473_v41 = vsub.f32 %v465_v35, %v469_v40 }
 0x25c   :  { %v475_v42 = vmul.f32 1.442695, %v473_v41 }
 0x25e   :  { %3615 = vpow2.f32 %v475_v42 }
 0x264   :  { %v3614_v43 = vpop.eup %3613 }
 0x265   :  { %v482_v44 = vsel %vm312_vm2, %v3614_v43, 0.0 }
 0x266   :  { %483 = vadd.xlane.f32.xlu1 %v482_v44 }
 0x268   :  { %v3616_v45 = vpop.eup %3615 }
 0x269   :  { %v479_v46 = vsel %vm312_vm2, %v3616_v45, 0.0 }
 0x26a   :  { %480 = vadd.xlane.f32.xlu1 %v479_v46 }
 0x2f3   :  { %v484_v55 = vpop.xlane.xlu1 %483 }
 0x2f4   :  { %3617 = vrcp.f32 %v484_v55  ;;  %v3025_v55 = vld [vmem:[%s4255_s3 + $0x50] sm:$0xff] }
 0x2f7   :  { %v481_v56 = vpop.xlane.xlu1 %480 }
 0x2f8   :  { %3619 = vrcp.f32 %v481_v56  ;;  %v3026_v56 = vld [vmem:[%s4255_s3 + $0x58] sm:$0xff] }
 0x2f9   :  { %v3533_v57 = vpack.c.bf16 %v3026_v56, %v3025_v55  ;;  %v3053_v55 = vld [vmem:[%s4255_s3 + $0x78] sm:$0xff] }
 0x2fe   :  { %v3618_v59 = vpop.eup %3617 }
 0x2ff   :  { %v488_v60 = vmul.f32 %v3618_v59, %v3614_v43  ;;  %v3036_v59 = vld [vmem:[%s4257_s5 + $0x48] sm:$0xff] }
 0x301   :  { %2660 = vst.msk [vmem:[#allocation4 + $0x20] sm:$0xff] %vm312_vm2, %v488_v60  ;;  %3270 = vmatmul.mubr.msk.f32.vlgmr.msra.gmra.mrb[8].mxu1 %vm312_vm2, %v488_v60  ;;  %v3037_v60 = vld [vmem:[%s4257_s5 + $0x50] sm:$0xff] }
 0x302   :  { %v3620_v0 = vpop.eup %3619  ;;  %3516 = vmatpush3.bf16.msra.mxu1 %v3513_v50  ;;  %3291 = vmatprep.mubr.msk.f32.mxu1 %vm66_vm0, %v3820_v9  ;;  %v3018_v50 = vld [vmem:[%s4258_s6 + $0x8] sm:$0xff]  ;;  %v3549_v63 = vpack.c.bf16 %v3038_v62, %v3037_v60 }
 0x303   :  { %v487_v1 = vmul.f32 %v3620_v0, %v3616_v45  ;;  %3518 = vmatprep.subr.bf16.mxu1 %v3517_v61 }
 0x305   :  { %2656 = vst.msk [vmem:[#allocation4] sm:$0xff] %vm312_vm2, %v487_v1  ;;  %3265 = vmatmul.mubr.msk.f32.vlgmr.msra.gmra.mrb[2].mxu0 %vm312_vm2, %v487_v1  ;;  %v3029_v1 = vld [vmem:[%s4256_s4 + $0x40] sm:$0xff] }
 0x306   :  { %3508 = vmatpush3.bf16.msra.mxu0 %v3505_v54  ;;  %3520 = vmatpush3.bf16.msra.mxu1 %v3517_v61  ;;  %v3529_v54 = vpack.c.bf16 %v3024_v53, %v3023_v52  ;;  %v3545_v61 = vpack.c.bf16 %v3036_v59, %v3035_v58  ;;  %v3051_v52 = vld [vmem:[%s4255_s3 + $0x68] sm:$0xff]  ;;  %v3059_v58 = vld [vmem:[%s4256_s4 + $0x78] sm:$0xff] }
 0x307   :  { %3510 = vmatprep.subr.bf16.mxu0 %v3509_v2  ;;  %3280 = vmatprep.mubr.msk.f32.mxu0 %vm66_vm0, %v3807_v5 }
 0x308   :  { %3305 = vmatprep.subr.mxu1 %v3701_v16 }
 0x309   :  { %3292 = vmatmul.mubr.msk.f32.vlgmr.msra.gmra.mrb[10].mxu1 %vm66_vm0, %v3842_v15 }
 0x30a   :  { %3512 = vmatpush3.bf16.msra.mxu0 %v3509_v2  ;;  %3307 = vmatprep.mubr.msk.f32.mxu1 %vm3702_vm1, %v3701_v16  ;;  %v3030_v2 = vld [vmem:[%s4256_s4 + $0x48] sm:$0xff] }
 0x30b   :  { %3522 = vmatprep.subr.bf16.mxu0 %v3521_v19 }
 0x30d   :  { %3281 = vmatmul.mubr.msk.f32.vlgmr.msra.gmra.mrb[4].mxu0 %vm66_vm0, %v3833_v13 }
 0x30e   :  { %3302 = vmatprep.mubr.msk.f32.mxu0 %vm66_vm0, %v3820_v9  ;;  %3524 = vmatpush3.bf16.msra.mxu0 %v3521_v19 }
 0x30f   :  { %3526 = vmatprep.subr.bf16.mxu0 %v3525_v21 }
 0x312   :  { %3528 = vmatpush3.bf16.msra.mxu0 %v3525_v21 }
 0x313   :  { %3315 = vmatprep.subr.mxu0 %v3701_v16 }
 0x315   :  { %3303 = vmatmul.mubr.msk.f32.vlgmr.msra.gmra.mrb[6].mxu0 %vm66_vm0, %v3842_v15 }
 0x316   :  { %3317 = vmatprep.mubr.msk.f32.mxu0 %vm3702_vm1, %v3701_v16 }
 0x3d4   :  { %v3937_v3 = vpop.f32.mrb[8].mxu1 }
 0x3d5   :  { %v3271_v4 = vpop.f32.mrb[9].mxu1 }
 0x3d8   :  { %v3939_v6 = vpop.f32.mrb[2].mxu0 }
 0x3d9   :  { %v3266_v7 = vpop.f32.mrb[3].mxu0 }
 0x3da   :  { %v3537_v7 = vpack.c.bf16 %v3030_v2, %v3029_v1 }
 0x3dc   :  { %v3293_v8 = vpop.f32.mrb[10].mxu1 }
 0x3dd   :  { %v787_v10 = vpop.f32.mrb[11].mxu1 }
 0x3de   :  { %3306 = vmatpush3.xpose.msk.msra.mxu1 %vm312_vm2, %v787_v10 }
 0x3df   :  { %3310 = vmatprep.subr.mxu1 %v3701_v16 }
 0x3e0   :  { %v3282_v11 = vpop.f32.mrb[4].mxu0 }
 0x3e1   :  { %v707_v12 = vpop.f32.mrb[5].mxu0 }
 0x3e2   :  { %3308 = vmatmul.mubr.msk.f32.vlgmr.msra.gmra.mrb[12].mxu1 %vm312_vm2, %v707_v12  ;;  %v3032_v12 = vld [vmem:[%s4256_s4 + $0x58] sm:$0xff] }
 0x3e3   :  { %3311 = vmatpush3.xpose.msk.msra.mxu1 %vm312_vm2, %v3293_v8  ;;  %3312 = vmatprep.mubr.msk.f32.mxu1 %vm3702_vm1, %v3701_v16 }
 0x3e4   :  { %3320 = vmatprep.subr.mxu1 %v3701_v16 }
 0x3e6   :  { %3313 = vmatmul.mubr.msk.f32.vlgmr.msra.gmra.mrb[14].mxu1 %vm312_vm2, %v3282_v11  ;;  %v3031_v11 = vld [vmem:[%s4256_s4 + $0x50] sm:$0xff] }
 0x3e7   :  { %3322 = vmatprep.mubr.msk.f32.mxu1 %vm3702_vm1, %v3701_v16  ;;  %v3541_v14 = vpack.c.bf16 %v3032_v12, %v3031_v11  ;;  %v3065_v11 = vld [vmem:[%s4257_s5 + $0x78] sm:$0xff] }
 0x3e8   :  { %v3304_v42 = vpop.f32.mrb[6].mxu0 }
 0x3e9   :  { %v867_v43 = vpop.f32.mrb[7].mxu0  ;;  %3321 = vmatpush3.msra.mxu1 %v3304_v42 }
 0x3ea   :  { %3316 = vmatpush3.msra.mxu0 %v867_v43  ;;  %3530 = vmatprep.subr.bf16.mxu1 %v3529_v54 }
 0x3eb   :  { %3325 = vmatprep.subr.mxu0 %v3018_v50 }
 0x4b5   :  { %v948_v22 = vpop.f32.mrb[12].mxu1 }
 0x4b6   :  { %v1028_v23 = vsel %vm60_vm4, -1e+09, %v948_v22  ;;  %v3309_v24 = vpop.f32.mrb[13].mxu1 }
 0x4b7   :  { %v1030_v25 = vsel %vm312_vm2, %v1028_v23, -inf }
 0x4b8   :  { %1031 = vmax.xlane.f32.xlu0 %v1030_v25 }
 0x4b9   :  { %v1024_v26 = vpop.f32.mrb[14].mxu1 }
 0x4ba   :  { %v1029_v28 = vsel %vm61_vm3, -1e+09, %v1024_v26  ;;  %v3314_v30 = vpop.f32.mrb[15].mxu1 }
 0x4bb   :  { %v1033_v31 = vsel %vm312_vm2, %v1029_v28, -inf }
 0x4bc   :  { %1034 = vmax.xlane.f32.xlu1 %v1033_v31 }
 0x545   :  { %v1032_v32 = vpop.xlane.xlu0 %1031 }
 0x546   :  { %v1036_v33 = vsub.f32 %v1028_v23, %v1032_v32 }
 0x548   :  { %v1038_v34 = vmul.f32 1.442695, %v1036_v33 }
 0x549   :  { %v1035_v35 = vpop.xlane.xlu1 %1034 }
 0x54a   :  { %3621 = vpow2.f32 %v1038_v34  ;;  %v1037_v36 = vsub.f32 %v1029_v28, %v1035_v35 }
 0x54c   :  { %v1040_v37 = vmul.f32 1.442695, %v1037_v36 }
 0x54e   :  { %3623 = vpow2.f32 %v1040_v37 }
 0x554   :  { %v3622_v38 = vpop.eup %3621 }
 0x555   :  { %v1042_v39 = vsel %vm312_vm2, %v3622_v38, 0.0 }
 0x556   :  { %1043 = vadd.xlane.f32.xlu0 %v1042_v39 }
 0x558   :  { %v3624_v40 = vpop.eup %3623 }
 0x559   :  { %v1045_v41 = vsel %vm312_vm2, %v3624_v40, 0.0 }
 0x55a   :  { %1046 = vadd.xlane.f32.xlu1 %v1045_v41  ;;  %v3047_v41 = vld [vmem:[%s4258_s6 + $0x10] sm:$0xff] }
 0x5e3   :  { %v1044_v44 = vpop.xlane.xlu0 %1043 }
 0x5e4   :  { %3625 = vrcp.f32 %v1044_v44 }
 0x5e7   :  { %v1047_v45 = vpop.xlane.xlu1 %1046 }
 0x5e8   :  { %3627 = vrcp.f32 %v1047_v45 }
 0x5ee   :  { %v3626_v46 = vpop.eup %3625 }
 0x5ef   :  { %v1050_v47 = vmul.f32 %v3626_v46, %v3622_v38 }
 0x5f1   :  { %2657 = vst.msk [vmem:[#allocation4 + $0x8] sm:$0xff] %vm312_vm2, %v1050_v47  ;;  %3318 = vmatmul.mubr.msk.f32.vlgmr.msra.gmra.mrb[8].mxu0 %vm312_vm2, %v1050_v47 }
 0x5f2   :  { %v3628_v48 = vpop.eup %3627  ;;  %3326 = vmatpush3.msra.mxu0 %v3018_v50 }
 0x5f3   :  { %v1051_v49 = vmul.f32 %v3628_v48, %v3624_v40  ;;  %3330 = vmatprep.subr.mxu0 %v635_v51  ;;  %v3056_v48 = vld [vmem:[%s4256_s4 + $0x60] sm:$0xff] }
 0x5f5   :  { %2661 = vst.msk [vmem:[#allocation4 + $0x28] sm:$0xff] %vm312_vm2, %v1051_v49  ;;  %3323 = vmatmul.mubr.msk.f32.vlgmr.msra.gmra.mrb[16].mxu1 %vm312_vm2, %v1051_v49  ;;  %v3057_v49 = vld [vmem:[%s4256_s4 + $0x68] sm:$0xff] }
 0x5f6   :  { %3343 = vmatprep.mubr.msk.f32.mxu1 %vm66_vm0, %v3807_v5  ;;  %3532 = vmatpush3.bf16.msra.mxu1 %v3529_v54  ;;  %v3561_v50 = vpack.c.bf16 %v3057_v49, %v3056_v48  ;;  %v3052_v54 = vld [vmem:[%s4255_s3 + $0x70] sm:$0xff] }
 0x5f7   :  { %3534 = vmatprep.subr.bf16.mxu1 %v3533_v57  ;;  %v3557_v56 = vpack.c.bf16 %v3053_v55, %v3052_v54 }
 0x5fa   :  { %3536 = vmatpush3.bf16.msra.mxu1 %v3533_v57  ;;  %v3058_v57 = vld [vmem:[%s4256_s4 + $0x70] sm:$0xff] }
 0x5fb   :  { %3546 = vmatprep.subr.bf16.mxu1 %v3545_v61  ;;  %v3565_v62 = vpack.c.bf16 %v3059_v58, %v3058_v57  ;;  %v2712_v58 = vld [vmem:[%s4261_s9 + $0x8] sm:$0xff] }
 0x5fd   :  { %3344 = vmatmul.mubr.msk.f32.vlgmr.msra.gmra.mrb[18].mxu1 %vm66_vm0, %v3833_v13 }
 0x5fe   :  { %3365 = vmatprep.mubr.msk.f32.mxu1 %vm66_vm0, %v3820_v9  ;;  %3548 = vmatpush3.bf16.msra.mxu1 %v3545_v61 }
 0x5ff   :  { %3550 = vmatprep.subr.bf16.mxu1 %v3549_v63 }
 0x602   :  { %3552 = vmatpush3.bf16.msra.mxu1 %v3549_v63 }
 0x603   :  { %3373 = vmatprep.subr.mxu1 %v3701_v16 }
 0x605   :  { %3366 = vmatmul.mubr.msk.f32.vlgmr.msra.gmra.mrb[20].mxu1 %vm66_vm0, %v3842_v15 }
 0x606   :  { %3375 = vmatprep.mubr.msk.f32.mxu1 %vm3702_vm1, %v3701_v16 }
 0x6c4   :  { %v1121_v0 = vpop.f32.mrb[8].mxu0 }
 0x6c5   :  { %v3319_v4 = vpop.f32.mrb[9].mxu0  ;;  %3327 = vmatprep.mubr.msk.f32.mxu0 %vm312_vm2, %v1121_v0 }
 0x6c8   :  { %v1194_v8 = vpop.f32.mrb[16].mxu1 }
 0x6c9   :  { %v3324_v10 = vpop.f32.mrb[17].mxu1  ;;  %3328 = vmatmul.mubr.msk.f32.vlgmr.msra.gmra.mrb[10].mxu0 %vm312_vm2, %v1194_v8  ;;  %v3064_v8 = vld [vmem:[%s4257_s5 + $0x70] sm:$0xff] }
 0x6ca   :  { %3331 = vmatpush3.msra.mxu0 %v635_v51  ;;  %3332 = vmatprep.mubr.msk.f32.mxu0 %vm312_vm2, %v3939_v6  ;;  %v3050_v51 = vld [vmem:[%s4255_s3 + $0x60] sm:$0xff]  ;;  %v3573_v12 = vpack.c.bf16 %v3065_v11, %v3064_v8  ;;  %v2810_v8 = vld [vmem:[%s4263_s11 + $0x28] sm:$0xff] }
 0x6cb   :  { %3538 = vmatprep.subr.bf16.mxu0 %v3537_v7  ;;  %v3553_v53 = vpack.c.bf16 %v3051_v52, %v3050_v51 }
 0x6d0   :  { %v3345_v6 = vpop.f32.mrb[18].mxu1 }
 0x6d1   :  { %3333 = vmatmul.mubr.msk.f32.vlgmr.msra.gmra.mrb[10].mxu0 %vm312_vm2, %v3937_v3  ;;  %v1433_v17 = vpop.f32.mrb[19].mxu1 }
 0x6d2   :  { %3540 = vmatpush3.bf16.msra.mxu0 %v3537_v7  ;;  %3354 = vmatprep.mubr.msk.f32.mxu0 %vm66_vm0, %v3820_v9  ;;  %v3063_v7 = vld [vmem:[%s4257_s5 + $0x68] sm:$0xff] }
 0x6d3   :  { %3542 = vmatprep.subr.bf16.mxu0 %v3541_v14 }
 0x6d6   :  { %3544 = vmatpush3.bf16.msra.mxu0 %v3541_v14 }
 0x6d7   :  { %3368 = vmatprep.subr.mxu0 %v3701_v16 }
 0x6d8   :  { %v3367_v18 = vpop.f32.mrb[20].mxu1 }
 0x6d9   :  { %3355 = vmatmul.mubr.msk.f32.vlgmr.msra.gmra.mrb[12].mxu0 %vm66_vm0, %v3842_v15  ;;  %v1593_v19 = vpop.f32.mrb[21].mxu1 }
 0x6da   :  { %3370 = vmatprep.mubr.msk.f32.mxu0 %vm3702_vm1, %v3701_v16 }
 0x7ac   :  { %v3356_v20 = vpop.f32.mrb[12].mxu0 }
 0x7ad   :  { %v1513_v3 = vpop.f32.mrb[13].mxu0  ;;  %3374 = vmatpush3.xpose.msk.msra.mxu1 %vm312_vm2, %v3356_v20 }
 0x7ae   :  { %3369 = vmatpush3.xpose.msk.msra.mxu0 %vm312_vm2, %v1513_v3  ;;  %3383 = vmatprep.subr.mxu1 %v3701_v16 }
 0x7af   :  { %3378 = vmatprep.subr.mxu0 %v3701_v16 }
 0x7b0   :  { %3376 = vmatmul.mubr.msk.f32.vlgmr.msra.gmra.mrb[22].mxu1 %vm312_vm2, %v3345_v6 }
 0x7b1   :  { %3371 = vmatmul.mubr.msk.f32.vlgmr.msra.gmra.mrb[14].mxu0 %vm312_vm2, %v1433_v17  ;;  %3384 = vmatpush3.msra.mxu1 %v3367_v18 }
 0x7b2   :  { %3379 = vmatpush3.msra.mxu0 %v1593_v19  ;;  %3385 = vmatprep.mubr.msk.f32.mxu1 %vm3702_vm1, %v3701_v16 }
 0x7b3   :  { %3380 = vmatprep.mubr.msk.f32.mxu0 %vm3702_vm1, %v3701_v16  ;;  %3388 = vmatprep.subr.mxu0 %v3047_v41 }
 0x7b4   :  { %3554 = vmatprep.subr.bf16.mxu1 %v3553_v53 }
 0x883   :  { %v1750_v21 = vpop.f32.mrb[22].mxu1 }
 0x884   :  { %v1755_v22 = vsel %vm61_vm3, -1e+09, %v1750_v21  ;;  %v1674_v23 = vpop.f32.mrb[14].mxu0  ;;  %v3377_v24 = vpop.f32.mrb[23].mxu1 }
 0x885   :  { %v1754_v25 = vsel %vm60_vm4, -1e+09, %v1674_v23  ;;  %v3372_v26 = vpop.f32.mrb[15].mxu0  ;;  %v1759_v28 = vsel %vm312_vm2, %v1755_v22, -inf }
 0x886   :  { %1760 = vmax.xlane.f32.xlu1 %v1759_v28  ;;  %v1756_v30 = vsel %vm312_vm2, %v1754_v25, -inf }
 0x887   :  { %1757 = vmax.xlane.f32.xlu0 %v1756_v30 }
 0x913   :  { %v1761_v31 = vpop.xlane.xlu1 %1760 }
 0x914   :  { %v1763_v32 = vsub.f32 %v1755_v22, %v1761_v31  ;;  %v1758_v33 = vpop.xlane.xlu0 %1757 }
 0x915   :  { %v1762_v34 = vsub.f32 %v1754_v25, %v1758_v33 }
 0x916   :  { %v1766_v35 = vmul.f32 1.442695, %v1763_v32 }
 0x917   :  { %v1764_v36 = vmul.f32 1.442695, %v1762_v34 }
 0x918   :  { %3629 = vpow2.f32 %v1766_v35 }
 0x919   :  { %3631 = vpow2.f32 %v1764_v36 }
 0x922   :  { %v3630_v37 = vpop.eup %3629 }
 0x923   :  { %v3632_v38 = vpop.eup %3631  ;;  %v1771_v39 = vsel %vm312_vm2, %v3630_v37, 0.0 }
 0x924   :  { %1772 = vadd.xlane.f32.xlu1 %v1771_v39  ;;  %v1768_v40 = vsel %vm312_vm2, %v3632_v38, 0.0 }
 0x925   :  { %1769 = vadd.xlane.f32.xlu0 %v1768_v40 }
 0x9b1   :  { %v1773_v42 = vpop.xlane.xlu1 %1772 }
 0x9b2   :  { %3633 = vrcp.f32 %v1773_v42  ;;  %v1770_v43 = vpop.xlane.xlu0 %1769 }
 0x9b3   :  { %3635 = vrcp.f32 %v1770_v43 }
 0x9bc   :  { %v3634_v44 = vpop.eup %3633 }
 0x9bd   :  { %v3636_v45 = vpop.eup %3635  ;;  %v1777_v46 = vmul.f32 %v3634_v44, %v3630_v37 }
 0x9be   :  { %v1776_v47 = vmul.f32 %v3636_v45, %v3632_v38  ;;  %v3074_v38 = vld [vmem:[%s4258_s6 + $0x18] sm:$0xff] }
 0x9bf   :  { %2662 = vst.msk [vmem:[#allocation4 + $0x30] sm:$0xff] %vm312_vm2, %v1777_v46  ;;  %3386 = vmatmul.mubr.msk.f32.vlgmr.msra.gmra.mrb[24].mxu1 %vm312_vm2, %v1777_v46 }
 0x9c0   :  { %2658 = vst.msk [vmem:[#allocation4 + $0x10] sm:$0xff] %vm312_vm2, %v1776_v47  ;;  %3381 = vmatmul.mubr.msk.f32.vlgmr.msra.gmra.mrb[16].mxu0 %vm312_vm2, %v1776_v47  ;;  %3401 = vmatprep.mubr.msk.f32.mxu1 %vm66_vm0, %v3807_v5 }
 0x9c1   :  { %3389 = vmatpush3.msra.mxu0 %v3047_v41  ;;  %3556 = vmatpush3.bf16.msra.mxu1 %v3553_v53 }
 0x9c2   :  { %3562 = vmatprep.subr.bf16.mxu0 %v3561_v50  ;;  %3558 = vmatprep.subr.bf16.mxu1 %v3557_v56 }
 0x9c5   :  { %3560 = vmatpush3.bf16.msra.mxu1 %v3557_v56 }
 0x9c8   :  { %3402 = vmatmul.mubr.msk.f32.vlgmr.msra.gmra.mrb[26].mxu1 %vm66_vm0, %v3833_v13 }
 0x9c9   :  { %3423 = vmatprep.mubr.msk.f32.mxu1 %vm66_vm0, %v3820_v9 }
 0xa92   :  { %v1920_v59 = vpop.f32.mrb[24].mxu1 }
 0xa93   :  { %v1847_v60 = vpop.f32.mrb[16].mxu0  ;;  %v3387_v61 = vpop.f32.mrb[25].mxu1 }
 0xa94   :  { %v3382_v63 = vpop.f32.mrb[17].mxu0  ;;  %3390 = vmatprep.mubr.msk.f32.mxu0 %vm312_vm2, %v1847_v60  ;;  %v2713_v60 = vld [vmem:[%s4261_s9 + $0x10] sm:$0xff]  ;;  %v2714_v61 = vld [vmem:[%s4261_s9 + $0x18] sm:$0xff] }
 0xa95   :  { %3391 = vmatmul.mubr.msk.f32.vlgmr.msra.gmra.mrb[10].mxu0 %vm312_vm2, %v1920_v59  ;;  %v2805_v63 = vld [vmem:[%s4263_s11] sm:$0xff] }
 0xa96   :  { %3564 = vmatpush3.bf16.msra.mxu0 %v3561_v50  ;;  %3412 = vmatprep.mubr.msk.f32.mxu0 %vm66_vm0, %v3820_v9  ;;  %v3062_v9 = vld [vmem:[%s4257_s5 + $0x60] sm:$0xff] }
 0xa97   :  { %3566 = vmatprep.subr.bf16.mxu0 %v3565_v62  ;;  %v3569_v10 = vpack.c.bf16 %v3063_v7, %v3062_v9  ;;  %v2809_v7 = vld [vmem:[%s4263_s11 + $0x20] sm:$0xff] }
 0xa99   :  { %3570 = vmatprep.subr.bf16.mxu1 %v3569_v10 }
 0xa9a   :  { %3568 = vmatpush3.bf16.msra.mxu0 %v3565_v62  ;;  %3572 = vmatpush3.bf16.msra.mxu1 %v3569_v10  ;;  %v3581_v62 = vpack.c.bf16 %v2714_v61, %v2713_v60  ;;  %v3593_v10 = vpack.c.bf16 %v2810_v8, %v2809_v7 }
 0xa9b   :  { %3426 = vmatprep.subr.mxu0 %v3701_v16  ;;  %v3403_v0 = vpop.f32.mrb[26].mxu1  ;;  %3574 = vmatprep.subr.bf16.mxu1 %v3573_v12 }
 0xa9c   :  { %v2080_v1 = vpop.f32.mrb[27].mxu1 }
 0xa9d   :  { %3413 = vmatmul.mubr.msk.f32.vlgmr.msra.gmra.mrb[18].mxu0 %vm66_vm0, %v3842_v15 }
 0xa9e   :  { %3428 = vmatprep.mubr.msk.f32.mxu0 %vm3702_vm1, %v3701_v16  ;;  %3576 = vmatpush3.bf16.msra.mxu1 %v3573_v12 }
 0xa9f   :  { %3436 = vmatprep.subr.mxu1 %v3701_v16 }
 0xaa1   :  { %3424 = vmatmul.mubr.msk.f32.vlgmr.msra.gmra.mrb[28].mxu1 %vm66_vm0, %v3842_v15 }
 0xaa2   :  { %3438 = vmatprep.mubr.msk.f32.mxu1 %vm3702_vm1, %v3701_v16 }
 0xb70   :  { %v3414_v2 = vpop.f32.mrb[18].mxu0 }
 0xb71   :  { %v2160_v4 = vpop.f32.mrb[19].mxu0 }
 0xb72   :  { %3427 = vmatpush3.xpose.msk.msra.mxu0 %vm312_vm2, %v2160_v4  ;;  %v2808_v4 = vld [vmem:[%s4263_s11 + $0x18] sm:$0xff] }
 0xb73   :  { %3431 = vmatprep.subr.mxu0 %v3701_v16 }
 0xb74   :  { %v3425_v30 = vpop.f32.mrb[28].mxu1 }
 0xb75   :  { %3429 = vmatmul.mubr.msk.f32.vlgmr.msra.gmra.mrb[20].mxu0 %vm312_vm2, %v2080_v1  ;;  %v2240_v31 = vpop.f32.mrb[29].mxu1  ;;  %v2807_v1 = vld [vmem:[%s4263_s11 + $0x10] sm:$0xff] }
 0xb76   :  { %3432 = vmatpush3.xpose.msk.msra.mxu0 %vm312_vm2, %v3414_v2  ;;  %3433 = vmatprep.mubr.msk.f32.mxu0 %vm3702_vm1, %v3701_v16  ;;  %v3589_v9 = vpack.c.bf16 %v2808_v4, %v2807_v1 }
 0xb77   :  { %3441 = vmatprep.subr.mxu0 %v3701_v16  ;;  %3437 = vmatpush3.msra.mxu1 %v2240_v31 }
 0xb79   :  { %3434 = vmatmul.mubr.msk.f32.vlgmr.msra.gmra.mrb[22].mxu0 %vm312_vm2, %v3403_v0  ;;  %v2806_v0 = vld [vmem:[%s4263_s11 + $0x8] sm:$0xff] }
 0xb7a   :  { %3443 = vmatprep.mubr.msk.f32.mxu0 %vm3702_vm1, %v3701_v16  ;;  %3442 = vmatpush3.msra.mxu0 %v3425_v30  ;;  %v3585_v2 = vpack.c.bf16 %v2806_v0, %v2805_v63 }
 0xb7b   :  { %3446 = vmatprep.subr.mxu0 %v3074_v38 }
 0xc48   :  { %v2321_v14 = vpop.f32.mrb[20].mxu0 }
 0xc49   :  { %v2401_v6 = vsel %vm60_vm4, -1e+09, %v2321_v14  ;;  %v3430_v17 = vpop.f32.mrb[21].mxu0 }
 0xc4a   :  { %v2403_v18 = vsel %vm312_vm2, %v2401_v6, -inf }
 0xc4b   :  { %2404 = vmax.xlane.f32.xlu0 %v2403_v18 }
 0xc4c   :  { %v2397_v19 = vpop.f32.mrb[22].mxu0 }
 0xc4d   :  { %v2402_v20 = vsel %vm61_vm3, -1e+09, %v2397_v19  ;;  %v3435_v3 = vpop.f32.mrb[23].mxu0 }
 0xc4e   :  { %v2406_v21 = vsel %vm312_vm2, %v2402_v20, -inf }
 0xc4f   :  { %2407 = vmax.xlane.f32.xlu1 %v2406_v21 }
 0xcd8   :  { %v2405_v15 = vpop.xlane.xlu0 %2404 }
 0xcd9   :  { %v2409_v22 = vsub.f32 %v2401_v6, %v2405_v15 }
 0xcdb   :  { %v2411_v23 = vmul.f32 1.442695, %v2409_v22  ;;  %v3078_v22 = vld [vmem:[%s4260_s8] ss:$0 sm:$0xff] }
 0xcdc   :  { %v2408_v16 = vpop.xlane.xlu1 %2407 }
 0xcdd   :  { %3637 = vpow2.f32 %v2411_v23  ;;  %v2410_v24 = vsub.f32 %v2402_v20, %v2408_v16  ;;  %v3077_v20 = vld [vmem:[%s4259_s7] ss:$0 sm:$0xff] }
 0xcdf   :  { %v2413_v29 = vmul.f32 1.442695, %v2410_v24 }
 0xce1   :  { %3639 = vpow2.f32 %v2413_v29 }
 0xce7   :  { %v3638_v25 = vpop.eup %3637 }
 0xce8   :  { %v2415_v26 = vsel %vm312_vm2, %v3638_v25, 0.0 }
 0xce9   :  { %2416 = vadd.xlane.f32.xlu0 %v2415_v26  ;;  %v2812_v26 = vld [vmem:[%s4263_s11 + $0x38] sm:$0xff] }
 0xceb   :  { %v3640_v28 = vpop.eup %3639 }
 0xcec   :  { %v2418_v27 = vsel %vm312_vm2, %v3640_v28, 0.0 }
 0xced   :  { %2419 = vadd.xlane.f32.xlu1 %v2418_v27  ;;  %v3079_v27 = vld [vmem:[%s4262_s10] ss:$0 sm:$0xff]  ;;  %s3703_s10 = smov [#allocation4]  }
 0xd76   :  { %v2417_v32 = vpop.xlane.xlu0 %2416 }
 0xd77   :  { %3641 = vrcp.f32 %v2417_v32 }
 0xd7a   :  { %v2420_v33 = vpop.xlane.xlu1 %2419 }
 0xd7b   :  { %3643 = vrcp.f32 %v2420_v33 }
 0xd81   :  { %v3642_v34 = vpop.eup %3641 }
 0xd82   :  { %v2423_v35 = vmul.f32 %v3642_v34, %v3638_v25  ;;  %v2811_v25 = vld [vmem:[%s4263_s11 + $0x30] sm:$0xff]  ;;  %s2967_s11 = sshll.u32 %s3703_s10, 4  ;;  %s2968_s11 = int_to_ptr.vmem [resolvable:$true] %s2967_s11 }
 0xd83   :  { %p3658_p1 = scmp.lt.s32.totalorder %s2968_s11, %s2968_s11 }
 0xd84   :  { %2659 = vst.msk [vmem:[#allocation4 + $0x18] sm:$0xff] %vm312_vm2, %v2423_v35  ;;  %3439 = vmatmul.mubr.msk.f32.vlgmr.msra.gmra.mrb[30].mxu1 %vm312_vm2, %v2423_v35 }
 0xd85   :  { %v3644_v36 = vpop.eup %3643 }
 0xd86   :  { %v2424_v37 = vmul.f32 %v3644_v36, %v3640_v28  ;;  %v3597_v28 = vpack.c.bf16 %v2812_v26, %v2811_v25  ;;  %v3082_v36 = vld [vmem:[%s4264_s12] ss:$0 sm:$0xff]  ;;  %s3653_s12 = scalar_lea.vmem %s2968_s11, 1024 }
 0xd87   :  { %p3654_p0 = scmp.ne.s32.totalorder %s2968_s11, %s3653_s12  ;;  %p3659_p2 = scmp.lt.s32.totalorder %s3653_s12, %s3653_s12 }
 0xd88   :  { %2663 = vst.msk [vmem:[#allocation4 + $0x38] sm:$0xff] %vm312_vm2, %v2424_v37  ;;  %3444 = vmatmul.mubr.msk.f32.vlgmr.msra.gmra.mrb[24].mxu0 %vm312_vm2, %v2424_v37 }
 0xd89   :  { %3447 = vmatpush3.msra.mxu0 %v3074_v38  ;;  %p3660_p3 = por %p3659_p2, %p3658_p1 }
 0xd8a   :  { %3586 = vmatprep.subr.bf16.mxu0 %v3585_v2 }
 0xd8b   :  { %p3661_p4 = pnand %p3660_p3, %p3654_p0 }
 0xe57   :  { %v2494_v39 = vpop.f32.mrb[30].mxu1 }
 0xe58   :  { %v3440_v40 = vpop.f32.mrb[31].mxu1  ;;  %3448 = vmatprep.mubr.msk.f32.mxu0 %vm312_vm2, %v2494_v39 }
 0xe5b   :  { %v2567_v41 = vpop.f32.mrb[24].mxu0 }
 0xe5c   :  { %v3445_v42 = vpop.f32.mrb[25].mxu0  ;;  %3449 = vmatmul.mubr.msk.f32.vlgmr.msra.gmra.mrb[10].mxu0 %vm312_vm2, %v2567_v41 }
 0xe5d   :  { %3588 = vmatpush3.bf16.msra.mxu0 %v3585_v2 }
 0xe5e   :  { %3590 = vmatprep.subr.bf16.mxu0 %v3589_v9 }
 0xe61   :  { %3592 = vmatpush3.bf16.msra.mxu0 %v3589_v9 }
 0xe62   :  { %3594 = vmatprep.subr.bf16.mxu0 %v3593_v10 }
 0xe65   :  { %3596 = vmatpush3.bf16.msra.mxu0 %v3593_v10 }
 0xe66   :  { %3598 = vmatprep.subr.bf16.mxu0 %v3597_v28 }
 0xe69   :  { %3600 = vmatpush3.bf16.msra.mxu0 %v3597_v28 }
 0xf2f   :  { %v3450_v43 = vpop.f32.mrb[10].mxu0 }
 0xf30   :  { %v2665_v44 = vadd.f32 %v3450_v43, %v3833_v13  ;;  %v2645_v45 = vpop.f32.mrb[11].mxu0 }
 0xf31   :  { %v2664_v46 = vadd.f32 %v2645_v45, %v3807_v5  ;;  %v2711_v5 = vld [vmem:[%s4261_s9] sm:$0xff] }
 0xf32   :  { %v2671_v47 = vsel %vm66_vm0, %v2665_v44, 0.0  ;;  %v3577_v59 = vpack.c.bf16 %v2712_v58, %v2711_v5 }
 0xf33   :  { %2672 = vadd.xlane.f32.xlu1 %v2671_v47  ;;  %v2668_v48 = vsel %vm66_vm0, %v2664_v46, 0.0 }
 0xf34   :  { %2669 = vadd.xlane.f32.xlu0 %v2668_v48  ;;  %3578 = vmatprep.subr.bf16.mxu1 %v3577_v59 }
 0xf35   :  { %3580 = vmatpush3.bf16.msra.mxu1 %v3577_v59 }
 0xf36   :  { %3582 = vmatprep.subr.bf16.mxu1 %v3581_v62 }
 0xf39   :  { %3584 = vmatpush3.bf16.msra.mxu1 %v3581_v62 }
 0xfc0   :  { %v2673_v49 = vpop.xlane.xlu1 %2672 }
 0xfc1   :  { %v2676_v50 = vmul.f32 0.03125, %v2673_v49  ;;  %v2670_v51 = vpop.xlane.xlu0 %2669 }
 0xfc2   :  { %v2675_v52 = vmul.f32 0.03125, %v2670_v51 }
 0xfc3   :  { %v2678_v53 = vsub.f32 %v2665_v44, %v2676_v50 }
 0xfc4   :  { %v2677_v54 = vsub.f32 %v2664_v46, %v2675_v52 }
 0xfc5   :  { %v2680_v55 = vmul.f32 %v2678_v53, %v2678_v53 }
 0xfc6   :  { %v2679_v56 = vmul.f32 %v2677_v54, %v2677_v54 }
 0xfc7   :  { %v2684_v57 = vsel %vm66_vm0, %v2680_v55, 0.0 }
 0xfc8   :  { %2685 = vadd.xlane.f32.xlu1 %v2684_v57  ;;  %v2681_v13 = vsel %vm66_vm0, %v2679_v56, 0.0 }
 0xfc9   :  { %2682 = vadd.xlane.f32.xlu0 %v2681_v13 }
0x1055   :  { %v2686_v11 = vpop.xlane.xlu1 %2685 }
0x1056   :  { %v2688_v12 = vmul.f32 0.03125, %v2686_v11  ;;  %v2683_v14 = vpop.xlane.xlu0 %2682 }
0x1057   :  { %v2687_v6 = vmul.f32 0.03125, %v2683_v14 }
0x1058   :  { %v2690_v17 = vadd.f32 1e-06, %v2688_v12 }
0x1059   :  { %v2689_v18 = vadd.f32 1e-06, %v2687_v6 }
0x105a   :  { %3645 = vrsqrt.f32 %v2690_v17 }
0x105b   :  { %3647 = vrsqrt.f32 %v2689_v18 }
0x1064   :  { %v3646_v19 = vpop.eup %3645 }
0x1065   :  { %v3648_v3 = vpop.eup %3647  ;;  %v2694_v21 = vmul.f32 %v3646_v19, %v2678_v53 }
0x1066   :  { %v2693_v15 = vmul.f32 %v3648_v3, %v2677_v54 }
0x1067   :  { %v2702_v23 = vmul.f32 %v3077_v20, %v2694_v21 }
0x1068   :  { %v2701_v16 = vmul.f32 %v3077_v20, %v2693_v15 }
0x1069   :  { %v2710_v29 = vadd.f32 %v3078_v22, %v2702_v23 }
0x106a   :  { %v2709_v24 = vadd.f32 %v3078_v22, %v2701_v16 }
0x106c   :  { %3459 = vmatprep.mubr.msk.f32.mxu1 %vm66_vm0, %v2709_v24 }
0x106d   :  { %3460 = vmatmul.mubr.msk.f32.vlgmr.msra.gmra.mrb[32].mxu1 %vm66_vm0, %v2710_v29 }
0x1140   :  { %v3461_v30 = vpop.f32.mrb[32].mxu1 }
0x1141   :  { %v2800_v31 = vadd.f32 %v3461_v30, %v3079_v27  ;;  %v2794_v32 = vpop.f32.mrb[33].mxu1 }
0x1142   :  { %v2795_v33 = vadd.f32 %v3079_v27, %v2794_v32 }
0x1143   :  { %v2804_v35 = vmax.f32 %v2800_v31, 0.0 }
0x1144   :  { %v2803_v34 = vmax.f32 %v2795_v33, 0.0 }
0x1146   :  { %3478 = vmatprep.mubr.msk.f32.mxu0 %vm2820_vm5, %v2803_v34 }
0x1147   :  { %3479 = vmatmul.mubr.msk.f32.vlgmr.msra.gmra.mrb[26].mxu0 %vm2820_vm5, %v2804_v35 }
0x121a   :  { %v3480_v37 = vpop.f32.mrb[26].mxu0 }
0x121b   :  { %v2899_v38 = vadd.f32 %v3480_v37, %v3082_v36  ;;  %v2893_v39 = vpop.f32.mrb[27].mxu0 }
0x121c   :  { %v2894_v40 = vadd.f32 %v3082_v36, %v2893_v39 }
0x121d   :  { %v2903_v41 = vadd.f32 %v2899_v38, %v2710_v29 }
0x121e   :  { %v2902_v42 = vadd.f32 %v2894_v40, %v2709_v24 }
0x121f   :  { %v2909_v43 = vsel %vm66_vm0, %v2903_v41, 0.0 }
0x1220   :  { %2910 = vadd.xlane.f32.xlu1 %v2909_v43  ;;  %v2906_v44 = vsel %vm66_vm0, %v2902_v42, 0.0 }
0x1221   :  { %2907 = vadd.xlane.f32.xlu0 %v2906_v44 }
0x12ad   :  { %v2911_v45 = vpop.xlane.xlu1 %2910 }
0x12ae   :  { %v2913_v46 = vmul.f32 0.03125, %v2911_v45  ;;  %v2908_v47 = vpop.xlane.xlu0 %2907 }
0x12af   :  { %v2912_v48 = vmul.f32 0.03125, %v2908_v47 }
0x12b0   :  { %v2915_v49 = vsub.f32 %v2903_v41, %v2913_v46 }
0x12b1   :  { %v2914_v50 = vsub.f32 %v2902_v42, %v2912_v48 }
0x12b2   :  { %v2917_v51 = vmul.f32 %v2915_v49, %v2915_v49 }
0x12b3   :  { %v2916_v52 = vmul.f32 %v2914_v50, %v2914_v50 }
0x12b4   :  { %v2921_v53 = vsel %vm66_vm0, %v2917_v51, 0.0 }
0x12b5   :  { %2922 = vadd.xlane.f32.xlu1 %v2921_v53  ;;  %v2918_v54 = vsel %vm66_vm0, %v2916_v52, 0.0 }
0x12b6   :  { %2919 = vadd.xlane.f32.xlu0 %v2918_v54 }
0x12b7   :  { %3664 = shalt.err (!%p3661_p4)
}
0x12b8   :  { %s3665_s27 = scalar_lea.hbm %s4268_s16, 1024 }
0x12b9   :  { %p3666_p5 = scmp.ne.s32.totalorder %s4268_s16, %s3665_s27  ;;  %p3669_p6 = scmp.lt.u32.totalorder %s3665_s27, %s4268_s16 }
0x12bb   :  { %p3671_p7 = pnand %p3669_p6, %p3666_p5 }
0x12bd   :  { %3674 = shalt.err (!%p3671_p7)
}
0x12be   :  { %s3704_s30 = smov 128   ;;  %s3705_s9 = smov 8   ;;  %v3085_v60 = vld [vmem:[%s4265_s13] ss:$0 sm:$0xff] }
0x12bf   :  { %2973 = dma.vmem_to_hbm [thread:$0]  %s2968_s11, 1024, %s4268_s16, [#allocation5], %s3704_s30, %s3704_s30, %s3705_s9  }
0x12c0   :  { %v3086_v63 = vld [vmem:[%s4266_s14] ss:$0 sm:$0xff]  ;;  %s3706_s16 = smov [#allocation2]  }
0x12c1   :  { %s2955_s19 = sshll.u32 %s3706_s16, 4  ;;  %s2956_s19 = int_to_ptr.vmem [resolvable:$true] %s2955_s19 }
0x12c2   :  { %s3675_s20 = scalar_lea.vmem %s2956_s19, 256  ;;  %p3680_p9 = scmp.lt.s32.totalorder %s2956_s19, %s2956_s19 }
0x12c3   :  { %p3676_p8 = scmp.ne.s32.totalorder %s2956_s19, %s3675_s20  ;;  %p3681_p10 = scmp.lt.s32.totalorder %s3675_s20, %s3675_s20 }
0x12c5   :  { %p3682_p11 = por %p3681_p10, %p3680_p9 }
0x12c7   :  { %p3683_p12 = pnand %p3682_p11, %p3676_p8 }
0x1342   :  { %v2923_v55 = vpop.xlane.xlu1 %2922 }
0x1343   :  { %v2925_v56 = vmul.f32 0.03125, %v2923_v55  ;;  %v2920_v57 = vpop.xlane.xlu0 %2919 }
0x1344   :  { %v2924_v13 = vmul.f32 0.03125, %v2920_v57 }
0x1345   :  { %v2927_v5 = vadd.f32 1e-06, %v2925_v56 }
0x1346   :  { %v2926_v58 = vadd.f32 1e-06, %v2924_v13 }
0x1347   :  { %3649 = vrsqrt.f32 %v2927_v5 }
0x1348   :  { %3651 = vrsqrt.f32 %v2926_v58 }
0x1351   :  { %v3650_v59 = vpop.eup %3649 }
0x1352   :  { %v3652_v61 = vpop.eup %3651  ;;  %v2931_v62 = vmul.f32 %v3650_v59, %v2915_v49 }
0x1353   :  { %v2930_v0 = vmul.f32 %v3652_v61, %v2914_v50 }
0x1354   :  { %v2939_v1 = vmul.f32 %v3085_v60, %v2931_v62 }
0x1355   :  { %v2938_v2 = vmul.f32 %v3085_v60, %v2930_v0 }
0x1356   :  { %v2947_v4 = vadd.f32 %v3086_v63, %v2939_v1 }
0x1357   :  { %v2946_v9 = vadd.f32 %v3086_v63, %v2938_v2 }
0x1358   :  { %2949 = vst.msk [vmem:[#allocation2 + $0x8] sm:$0xff] %vm66_vm0, %v2947_v4 }
0x1359   :  { %2948 = vst.msk [vmem:[#allocation2] sm:$0xff] %vm66_vm0, %v2946_v9 }
0x135a   :  { %3686 = shalt.err (!%p3683_p12)
}
0x135b   :  { %s3687_s21 = scalar_lea.hbm %s4267_s15, 256 }
0x135c   :  { %p3688_p13 = scmp.ne.s32.totalorder %s4267_s15, %s3687_s21  ;;  %p3691_p0 = scmp.lt.u32.totalorder %s3687_s21, %s4267_s15 }
0x135e   :  { %p3693_p1 = pnand %p3691_p0, %p3688_p13 }
0x1360   :  { %3696 = shalt.err (!%p3693_p1)
}
0x1361   :  { %2961 = dma.vmem_to_hbm [thread:$0]  %s2956_s19, 256, %s4267_s15, [#allocation3], %s3704_s30, %s3704_s30, %s3705_s9  }
0x1362   :  { %3697 = dma.done.wait [#allocation3], 256  }
0x1363   :  { %3698 = vsyncadd [#allocation3], 4294967040 }
0x1364   :  { %3699 = dma.done.wait [#allocation5], 1024  }
0x1365   :  { %3700 = vsyncadd [#allocation5], 4294966272 }
0x1366   :  { %2980 = vsyncpa [#allocation3], 1 }
0x1367   :  { %2981 = vsyncpa [#allocation5], 1 }

</bundles_post_ra>
